<compile_context>
chip_gen: v7x
topology: tpu7x:2x2x1
jax: 0.10.0
libtpu: 0.0.40
codegen_flags: <defaults>
</compile_context>

<pallas_src>
import math
import numpy as np
import jax
import jax.numpy as jnp
from jax import lax
from jax.experimental import pallas as pl
from jax.experimental.pallas import tpu as pltpu


# ------------------------------ fused ISAB kernel ------------------------------
def isab_pallas(X, I, params0, params1, num_heads):
    B, N, dim_in = X.shape
    num_inds, dim_out = I.shape[1], I.shape[2]
    assert dim_out % num_heads == 0, "dim_out must be divisible by num_heads"
    dsplit = dim_out // num_heads
    scale = 1.0 / math.sqrt(dsplit)
    dV = dim_out

    # ---- host-side operand fusion (traced once, outside the kernel) ----
    wq0, bq0, wk0, bk0, wv0, bv0, wo0, bo0 = params0   # mab0: dQ=dim_out, dK=dim_in
    wq1, bq1, wk1, bk1, wv1, bv1, wo1, bo1 = params1   # mab1: dQ=dim_in,  dK=dim_out
    # softmax scale folded into fc_k weights/biases (K never feeds the residual)
    wqo0 = jnp.concatenate([wq0, wo0], axis=1)                 # (dim_out, 2*dV)
    wkv0 = jnp.concatenate([wk0 * scale, wv0], axis=1)         # (dim_in,  2*dV)
    wkvo1 = jnp.concatenate([wk1 * scale, wv1, wo1], axis=1)   # (dim_out, 3*dV)
    biases = jnp.concatenate(                                  # (8, dV), sublane-stacked
        [bq0, bk0 * scale, bv0, bo0, bq1, bk1 * scale, bv1, bo1], axis=0)

    X2 = X.reshape(B * N, dim_in)          # stack batches along sublanes
    I2 = I.reshape(num_inds, dim_out)

    def isab_kernel(i_ref, x_ref, wqo0_ref, wkv0_ref, wq1_ref, wkvo1_ref, b_ref, o_ref):
        Xall = x_ref[...]                  # (B*N, dim_in)
        Iv = i_ref[...]                    # (num_inds, dV)
        bias = b_ref[...]                  # (8, dV)
        WQO0 = wqo0_ref[...]
        WKV0 = wkv0_ref[...]
        WQ1 = wq1_ref[...]
        WKVO1 = wkvo1_ref[...]

        def attend(Qp, Kp, Vp):
            # Per-head attention; results stay in vregs and are lane-concatenated once.
            heads = []
            for h in range(num_heads):
                lo = h * dsplit
                Qh = Qp[:, lo:lo + dsplit]             # (Sq, dsplit)
                Kh = Kp[:, lo:lo + dsplit]             # (Sk, dsplit), already scaled
                Vh = Vp[:, lo:lo + dsplit]             # (Sk, dsplit)
                # Qh @ Kh^T without materializing the transpose.
                s = lax.dot_general(Qh, Kh, (((1,), (1,)), ((), ())),
                                    preferred_element_type=jnp.float32)   # (Sq, Sk)
                s = s - jnp.max(s, axis=-1, keepdims=True)
                e = jnp.exp(s)
                inv = pl.reciprocal(jnp.sum(e, axis=-1, keepdims=True), approx=True)
                heads.append(Qh + jnp.dot(e * inv, Vh,
                                          preferred_element_type=jnp.float32))
            return jnp.concatenate(heads, axis=-1)     # (Sq, dV)

        # ---------------- MAB0: H = MAB(I, X) ----------------
        # Q projection of I is batch-invariant -> computed once.
        Qp0 = jnp.dot(Iv, WQO0[:, :dV], preferred_element_type=jnp.float32) + bias[0:1, :]
        # K/V projection over all batches in one matmul (better MXU fill).
        KV0 = jnp.dot(Xall, WKV0, preferred_element_type=jnp.float32)
        Kp0 = KV0[:, :dV] + bias[1:2, :]
        Vp0 = KV0[:, dV:] + bias[2:3, :]
        O0 = jnp.concatenate(
            [attend(Qp0, Kp0[b * N:(b + 1) * N], Vp0[b * N:(b + 1) * N])
             for b in range(B)],
            axis=0)                                            # (B*num_inds, dV)
        FF0 = jnp.dot(O0, WQO0[:, dV:], preferred_element_type=jnp.float32) + bias[3:4, :]
        H = O0 + jnp.maximum(FF0, 0.0)                         # stays in vregs/VMEM values

        # ---------------- MAB1: out = MAB(X, H) ----------------
        Qp1 = jnp.dot(Xall, WQ1, preferred_element_type=jnp.float32) + bias[4:5, :]
        KV1 = jnp.dot(H, WKVO1[:, :2 * dV], preferred_element_type=jnp.float32)
        Kp1 = KV1[:, :dV] + bias[5:6, :]
        Vp1 = KV1[:, dV:] + bias[6:7, :]
        O1 = jnp.concatenate(
            [attend(Qp1[b * N:(b + 1) * N],
                    Kp1[b * num_inds:(b + 1) * num_inds],
                    Vp1[b * num_inds:(b + 1) * num_inds])
             for b in range(B)],
            axis=0)                                            # (B*N, dV)
        FF1 = jnp.dot(O1, WKVO1[:, 2 * dV:], preferred_element_type=jnp.float32) + bias[7:8, :]
        o_ref[...] = O1 + jnp.maximum(FF1, 0.0)

    out = pl.pallas_call(
        isab_kernel,
        out_shape=jax.ShapeDtypeStruct((B * N, dim_out), jnp.float32),
    )(I2, X2, wqo0, wkv0, wq1, wkvo1, biases)
    return out.reshape(B, N, dim_out)


# ----------------------------- pure-JAX reference -----------------------------
def mab_ref(Q, K, params, num_heads):
    wq, bq, wk, bk, wv, bv, wo, bo = params
    B = Q.shape[0]
    dV = wq.shape[1]
    ds_ = dV // num_heads
    Qp = Q @ wq + bq
    Kp = K @ wk + bk
    Vp = K @ wv + bv

    def split(x):
        return x.reshape(B, -1, num_heads, ds_).transpose(0, 2, 1, 3)

    Qh, Kh, Vh = split(Qp), split(Kp), split(Vp)
    s = jnp.einsum("bhqd,bhkd->bhqk", Qh, Kh) / math.sqrt(ds_)
    A = jax.nn.softmax(s, axis=-1)
    O = Qh + jnp.einsum("bhqk,bhkd->bhqd", A, Vh)
    O = O.transpose(0, 2, 1, 3).reshape(B, -1, dV)
    return O + jax.nn.relu(O @ wo + bo)


def isab_ref(X, I, params0, params1, num_heads):
    B = X.shape[0]
    I_rep = jnp.broadcast_to(I, (B,) + I.shape[1:])
    H = mab_ref(I_rep, X, params0, num_heads)
    return mab_ref(X, H, params1, num_heads)


# ---------------------------------- init ---------------------------------------
def init_linear(key, d_in, d_out):
    k1, k2 = jax.random.split(key)
    bound = 1.0 / math.sqrt(d_in)
    W = jax.random.uniform(k1, (d_in, d_out), jnp.float32, -bound, bound)
    b = jax.random.uniform(k2, (1, d_out), jnp.float32, -bound, bound)
    return W, b


def init_mab_params(key, dQ, dK, dV):
    ks = jax.random.split(key, 4)
    wq, bq = init_linear(ks[0], dQ, dV)
    wk, bk = init_linear(ks[1], dK, dV)
    wv, bv = init_linear(ks[2], dK, dV)
    wo, bo = init_linear(ks[3], dV, dV)
    return (wq, bq, wk, bk, wv, bv, wo, bo)


# TODO(synk): optional `mask` argument of MAB (masked_fill of attention scores) is not
# implemented; ISAB's forward here runs with mask=None, matching the module default path.
# TODO(synk): ln=True (LayerNorm) branch of MAB is not implemented (ISAB constructed with ln=False).
# TODO(synk): bf16 cast of the QK^T / PV operands skipped to keep the 2e-3 tolerance; the kernel
# is overhead-bound so the MXU-side win would be negligible anyway.

if __name__ == "__main__":
    B, N = 2, 16
    dim_in, dim_out = 32, 32
    num_heads, num_inds = 4, 8

    key = jax.random.PRNGKey(0)
    kx, ki, k0, k1 = jax.random.split(key, 4)

    X = jax.random.normal(kx, (B, N, dim_in), jnp.float32)
    # nn.init.xavier_uniform_ for I: bound = sqrt(6 / (num_inds + dim_out))
    bnd = math.sqrt(6.0 / (num_inds + dim_out))
    I = jax.random.uniform(ki, (1, num_inds, dim_out), jnp.float32, -bnd, bnd)

    params0 = init_mab_params(k0, dim_out, dim_in, dim_out)   # mab0
    params1 = init_mab_params(k1, dim_in, dim_out, dim_out)   # mab1

    out = isab_pallas(X, I, params0, params1, num_heads)
    out = jax.block_until_ready(out)

    ref = isab_ref(X, I, params0, params1, num_heads)
    # Slightly looser tolerance to accommodate the approx reciprocal in the softmax.
    np.testing.assert_allclose(np.asarray(out), np.asarray(ref), rtol=2e-3, atol=2e-3)

    print("KERNEL_OK")
</pallas_src>

<mosaic_0001>
module attributes {stable_mosaic.version = 11 : i64} {
  func.func @isab_kernel(%arg0: memref<8x32xf32, #tpu.memory_space<vmem>>, %arg1: memref<32x32xf32, #tpu.memory_space<vmem>>, %arg2: memref<32x64xf32, #tpu.memory_space<vmem>>, %arg3: memref<32x64xf32, #tpu.memory_space<vmem>>, %arg4: memref<32x32xf32, #tpu.memory_space<vmem>>, %arg5: memref<32x96xf32, #tpu.memory_space<vmem>>, %arg6: memref<8x32xf32, #tpu.memory_space<vmem>>, %arg7: memref<32x32xf32, #tpu.memory_space<vmem>>) attributes {dimension_semantics = [], scalar_prefetch = 0 : i64, scratch_operands = 0 : i64, tpu.core_type = #tpu.core_type<tc>} {
    %c0 = arith.constant 0 : index
    %c0_0 = arith.constant 0 : index
    %0 = vector.load %arg1[%c0, %c0_0] : memref<32x32xf32, #tpu.memory_space<vmem>>, vector<32x32xf32>
    %c0_1 = arith.constant 0 : index
    %c0_2 = arith.constant 0 : index
    %1 = vector.load %arg0[%c0_1, %c0_2] : memref<8x32xf32, #tpu.memory_space<vmem>>, vector<8x32xf32>
    %c0_3 = arith.constant 0 : index
    %c0_4 = arith.constant 0 : index
    %2 = vector.load %arg6[%c0_3, %c0_4] : memref<8x32xf32, #tpu.memory_space<vmem>>, vector<8x32xf32>
    %c0_5 = arith.constant 0 : index
    %c0_6 = arith.constant 0 : index
    %3 = vector.load %arg2[%c0_5, %c0_6] : memref<32x64xf32, #tpu.memory_space<vmem>>, vector<32x64xf32>
    %c0_7 = arith.constant 0 : index
    %c0_8 = arith.constant 0 : index
    %4 = vector.load %arg3[%c0_7, %c0_8] : memref<32x64xf32, #tpu.memory_space<vmem>>, vector<32x64xf32>
    %c0_9 = arith.constant 0 : index
    %c0_10 = arith.constant 0 : index
    %5 = vector.load %arg4[%c0_9, %c0_10] : memref<32x32xf32, #tpu.memory_space<vmem>>, vector<32x32xf32>
    %c0_11 = arith.constant 0 : index
    %c0_12 = arith.constant 0 : index
    %6 = vector.load %arg5[%c0_11, %c0_12] : memref<32x96xf32, #tpu.memory_space<vmem>>, vector<32x96xf32>
    %7 = vector.extract_strided_slice %3 {offsets = [0, 0], sizes = [32, 32], strides = [1, 1]} : vector<32x64xf32> to vector<32x32xf32>
    %cst = arith.constant dense<0.000000e+00> : vector<8x32xf32>
    %8 = tpu.matmul %1, %7, %cst {dimension_numbers = #tpu.dot_dimension_numbers<[1], [0], [0], [1], [0, 0, 1, 1], [], []>} : vector<8x32xf32>, vector<32x32xf32>, vector<8x32xf32> -> vector<8x32xf32>
    %9 = vector.extract_strided_slice %2 {offsets = [0, 0], sizes = [1, 32], strides = [1, 1]} : vector<8x32xf32> to vector<1x32xf32>
    %10 = vector.broadcast %9 : vector<1x32xf32> to vector<8x32xf32>
    %11 = arith.addf %8, %10 : vector<8x32xf32>
    %cst_13 = arith.constant dense<0.000000e+00> : vector<32x64xf32>
    %12 = tpu.matmul %0, %4, %cst_13 {dimension_numbers = #tpu.dot_dimension_numbers<[1], [0], [0], [1], [0, 0, 1, 1], [], []>} : vector<32x32xf32>, vector<32x64xf32>, vector<32x64xf32> -> vector<32x64xf32>
    %13 = vector.extract_strided_slice %12 {offsets = [0, 0], sizes = [32, 32], strides = [1, 1]} : vector<32x64xf32> to vector<32x32xf32>
    %14 = vector.extract_strided_slice %2 {offsets = [1, 0], sizes = [1, 32], strides = [1, 1]} : vector<8x32xf32> to vector<1x32xf32>
    %15 = vector.broadcast %14 : vector<1x32xf32> to vector<32x32xf32>
    %16 = arith.addf %13, %15 : vector<32x32xf32>
    %17 = vector.extract_strided_slice %12 {offsets = [0, 32], sizes = [32, 32], strides = [1, 1]} : vector<32x64xf32> to vector<32x32xf32>
    %18 = vector.extract_strided_slice %2 {offsets = [2, 0], sizes = [1, 32], strides = [1, 1]} : vector<8x32xf32> to vector<1x32xf32>
    %19 = vector.broadcast %18 : vector<1x32xf32> to vector<32x32xf32>
    %20 = arith.addf %17, %19 : vector<32x32xf32>
    %21 = vector.extract_strided_slice %16 {offsets = [0, 0], sizes = [16, 32], strides = [1, 1]} : vector<32x32xf32> to vector<16x32xf32>
    %22 = vector.extract_strided_slice %20 {offsets = [0, 0], sizes = [16, 32], strides = [1, 1]} : vector<32x32xf32> to vector<16x32xf32>
    %23 = vector.extract_strided_slice %11 {offsets = [0, 0], sizes = [8, 8], strides = [1, 1]} : vector<8x32xf32> to vector<8x8xf32>
    %24 = vector.extract_strided_slice %21 {offsets = [0, 0], sizes = [16, 8], strides = [1, 1]} : vector<16x32xf32> to vector<16x8xf32>
    %25 = vector.extract_strided_slice %22 {offsets = [0, 0], sizes = [16, 8], strides = [1, 1]} : vector<16x32xf32> to vector<16x8xf32>
    %cst_14 = arith.constant dense<0.000000e+00> : vector<8x16xf32>
    %26 = tpu.matmul %23, %24, %cst_14 {dimension_numbers = #tpu.dot_dimension_numbers<[1], [1], [0], [0], [0, 0, 1, 0], [], []>} : vector<8x8xf32>, vector<16x8xf32>, vector<8x16xf32> -> vector<8x16xf32>
    %cst_15 = arith.constant dense<0xFF800000> : vector<8xf32>
    %27 = vector.multi_reduction <maximumf>, %26, %cst_15 [1] : vector<8x16xf32> to vector<8xf32>
    %28 = vector.shape_cast %27 : vector<8xf32> to vector<8x1xf32>
    %29 = vector.broadcast %28 : vector<8x1xf32> to vector<8x16xf32>
    %30 = arith.subf %26, %29 : vector<8x16xf32>
    %31 = math.exp %30 : vector<8x16xf32>
    %cst_16 = arith.constant dense<0.000000e+00> : vector<8xf32>
    %32 = vector.multi_reduction <add>, %31, %cst_16 [1] : vector<8x16xf32> to vector<8xf32>
    %33 = vector.shape_cast %32 : vector<8xf32> to vector<8x1xf32>
    %34 = tpu.reciprocal %33 {approx = true} : vector<8x1xf32> -> vector<8x1xf32>
    %35 = vector.broadcast %34 : vector<8x1xf32> to vector<8x16xf32>
    %36 = arith.mulf %31, %35 : vector<8x16xf32>
    %cst_17 = arith.constant dense<0.000000e+00> : vector<8x8xf32>
    %37 = tpu.matmul %36, %25, %cst_17 {dimension_numbers = #tpu.dot_dimension_numbers<[1], [0], [0], [1], [0, 0, 1, 1], [], []>} : vector<8x16xf32>, vector<16x8xf32>, vector<8x8xf32> -> vector<8x8xf32>
    %38 = arith.addf %23, %37 : vector<8x8xf32>
    %39 = vector.extract_strided_slice %11 {offsets = [0, 8], sizes = [8, 8], strides = [1, 1]} : vector<8x32xf32> to vector<8x8xf32>
    %40 = vector.extract_strided_slice %21 {offsets = [0, 8], sizes = [16, 8], strides = [1, 1]} : vector<16x32xf32> to vector<16x8xf32>
    %41 = vector.extract_strided_slice %22 {offsets = [0, 8], sizes = [16, 8], strides = [1, 1]} : vector<16x32xf32> to vector<16x8xf32>
    %cst_18 = arith.constant dense<0.000000e+00> : vector<8x16xf32>
    %42 = tpu.matmul %39, %40, %cst_18 {dimension_numbers = #tpu.dot_dimension_numbers<[1], [1], [0], [0], [0, 0, 1, 0], [], []>} : vector<8x8xf32>, vector<16x8xf32>, vector<8x16xf32> -> vector<8x16xf32>
    %cst_19 = arith.constant dense<0xFF800000> : vector<8xf32>
    %43 = vector.multi_reduction <maximumf>, %42, %cst_19 [1] : vector<8x16xf32> to vector<8xf32>
    %44 = vector.shape_cast %43 : vector<8xf32> to vector<8x1xf32>
    %45 = vector.broadcast %44 : vector<8x1xf32> to vector<8x16xf32>
    %46 = arith.subf %42, %45 : vector<8x16xf32>
    %47 = math.exp %46 : vector<8x16xf32>
    %cst_20 = arith.constant dense<0.000000e+00> : vector<8xf32>
    %48 = vector.multi_reduction <add>, %47, %cst_20 [1] : vector<8x16xf32> to vector<8xf32>
    %49 = vector.shape_cast %48 : vector<8xf32> to vector<8x1xf32>
    %50 = tpu.reciprocal %49 {approx = true} : vector<8x1xf32> -> vector<8x1xf32>
    %51 = vector.broadcast %50 : vector<8x1xf32> to vector<8x16xf32>
    %52 = arith.mulf %47, %51 : vector<8x16xf32>
    %cst_21 = arith.constant dense<0.000000e+00> : vector<8x8xf32>
    %53 = tpu.matmul %52, %41, %cst_21 {dimension_numbers = #tpu.dot_dimension_numbers<[1], [0], [0], [1], [0, 0, 1, 1], [], []>} : vector<8x16xf32>, vector<16x8xf32>, vector<8x8xf32> -> vector<8x8xf32>
    %54 = arith.addf %39, %53 : vector<8x8xf32>
    %55 = vector.extract_strided_slice %11 {offsets = [0, 16], sizes = [8, 8], strides = [1, 1]} : vector<8x32xf32> to vector<8x8xf32>
    %56 = vector.extract_strided_slice %21 {offsets = [0, 16], sizes = [16, 8], strides = [1, 1]} : vector<16x32xf32> to vector<16x8xf32>
    %57 = vector.extract_strided_slice %22 {offsets = [0, 16], sizes = [16, 8], strides = [1, 1]} : vector<16x32xf32> to vector<16x8xf32>
    %cst_22 = arith.constant dense<0.000000e+00> : vector<8x16xf32>
    %58 = tpu.matmul %55, %56, %cst_22 {dimension_numbers = #tpu.dot_dimension_numbers<[1], [1], [0], [0], [0, 0, 1, 0], [], []>} : vector<8x8xf32>, vector<16x8xf32>, vector<8x16xf32> -> vector<8x16xf32>
    %cst_23 = arith.constant dense<0xFF800000> : vector<8xf32>
    %59 = vector.multi_reduction <maximumf>, %58, %cst_23 [1] : vector<8x16xf32> to vector<8xf32>
    %60 = vector.shape_cast %59 : vector<8xf32> to vector<8x1xf32>
    %61 = vector.broadcast %60 : vector<8x1xf32> to vector<8x16xf32>
    %62 = arith.subf %58, %61 : vector<8x16xf32>
    %63 = math.exp %62 : vector<8x16xf32>
    %cst_24 = arith.constant dense<0.000000e+00> : vector<8xf32>
    %64 = vector.multi_reduction <add>, %63, %cst_24 [1] : vector<8x16xf32> to vector<8xf32>
    %65 = vector.shape_cast %64 : vector<8xf32> to vector<8x1xf32>
    %66 = tpu.reciprocal %65 {approx = true} : vector<8x1xf32> -> vector<8x1xf32>
    %67 = vector.broadcast %66 : vector<8x1xf32> to vector<8x16xf32>
    %68 = arith.mulf %63, %67 : vector<8x16xf32>
    %cst_25 = arith.constant dense<0.000000e+00> : vector<8x8xf32>
    %69 = tpu.matmul %68, %57, %cst_25 {dimension_numbers = #tpu.dot_dimension_numbers<[1], [0], [0], [1], [0, 0, 1, 1], [], []>} : vector<8x16xf32>, vector<16x8xf32>, vector<8x8xf32> -> vector<8x8xf32>
    %70 = arith.addf %55, %69 : vector<8x8xf32>
    %71 = vector.extract_strided_slice %11 {offsets = [0, 24], sizes = [8, 8], strides = [1, 1]} : vector<8x32xf32> to vector<8x8xf32>
    %72 = vector.extract_strided_slice %21 {offsets = [0, 24], sizes = [16, 8], strides = [1, 1]} : vector<16x32xf32> to vector<16x8xf32>
    %73 = vector.extract_strided_slice %22 {offsets = [0, 24], sizes = [16, 8], strides = [1, 1]} : vector<16x32xf32> to vector<16x8xf32>
    %cst_26 = arith.constant dense<0.000000e+00> : vector<8x16xf32>
    %74 = tpu.matmul %71, %72, %cst_26 {dimension_numbers = #tpu.dot_dimension_numbers<[1], [1], [0], [0], [0, 0, 1, 0], [], []>} : vector<8x8xf32>, vector<16x8xf32>, vector<8x16xf32> -> vector<8x16xf32>
    %cst_27 = arith.constant dense<0xFF800000> : vector<8xf32>
    %75 = vector.multi_reduction <maximumf>, %74, %cst_27 [1] : vector<8x16xf32> to vector<8xf32>
    %76 = vector.shape_cast %75 : vector<8xf32> to vector<8x1xf32>
    %77 = vector.broadcast %76 : vector<8x1xf32> to vector<8x16xf32>
    %78 = arith.subf %74, %77 : vector<8x16xf32>
    %79 = math.exp %78 : vector<8x16xf32>
    %cst_28 = arith.constant dense<0.000000e+00> : vector<8xf32>
    %80 = vector.multi_reduction <add>, %79, %cst_28 [1] : vector<8x16xf32> to vector<8xf32>
    %81 = vector.shape_cast %80 : vector<8xf32> to vector<8x1xf32>
    %82 = tpu.reciprocal %81 {approx = true} : vector<8x1xf32> -> vector<8x1xf32>
    %83 = vector.broadcast %82 : vector<8x1xf32> to vector<8x16xf32>
    %84 = arith.mulf %79, %83 : vector<8x16xf32>
    %cst_29 = arith.constant dense<0.000000e+00> : vector<8x8xf32>
    %85 = tpu.matmul %84, %73, %cst_29 {dimension_numbers = #tpu.dot_dimension_numbers<[1], [0], [0], [1], [0, 0, 1, 1], [], []>} : vector<8x16xf32>, vector<16x8xf32>, vector<8x8xf32> -> vector<8x8xf32>
    %86 = arith.addf %71, %85 : vector<8x8xf32>
    %87 = tpu.concatenate %38, %54, %70, %86 in 1 : vector<8x8xf32>, vector<8x8xf32>, vector<8x8xf32>, vector<8x8xf32> -> vector<8x32xf32>
    %88 = vector.extract_strided_slice %16 {offsets = [16, 0], sizes = [16, 32], strides = [1, 1]} : vector<32x32xf32> to vector<16x32xf32>
    %89 = vector.extract_strided_slice %20 {offsets = [16, 0], sizes = [16, 32], strides = [1, 1]} : vector<32x32xf32> to vector<16x32xf32>
    %90 = vector.extract_strided_slice %11 {offsets = [0, 0], sizes = [8, 8], strides = [1, 1]} : vector<8x32xf32> to vector<8x8xf32>
    %91 = vector.extract_strided_slice %88 {offsets = [0, 0], sizes = [16, 8], strides = [1, 1]} : vector<16x32xf32> to vector<16x8xf32>
    %92 = vector.extract_strided_slice %89 {offsets = [0, 0], sizes = [16, 8], strides = [1, 1]} : vector<16x32xf32> to vector<16x8xf32>
    %cst_30 = arith.constant dense<0.000000e+00> : vector<8x16xf32>
    %93 = tpu.matmul %90, %91, %cst_30 {dimension_numbers = #tpu.dot_dimension_numbers<[1], [1], [0], [0], [0, 0, 1, 0], [], []>} : vector<8x8xf32>, vector<16x8xf32>, vector<8x16xf32> -> vector<8x16xf32>
    %cst_31 = arith.constant dense<0xFF800000> : vector<8xf32>
    %94 = vector.multi_reduction <maximumf>, %93, %cst_31 [1] : vector<8x16xf32> to vector<8xf32>
    %95 = vector.shape_cast %94 : vector<8xf32> to vector<8x1xf32>
    %96 = vector.broadcast %95 : vector<8x1xf32> to vector<8x16xf32>
    %97 = arith.subf %93, %96 : vector<8x16xf32>
    %98 = math.exp %97 : vector<8x16xf32>
    %cst_32 = arith.constant dense<0.000000e+00> : vector<8xf32>
    %99 = vector.multi_reduction <add>, %98, %cst_32 [1] : vector<8x16xf32> to vector<8xf32>
    %100 = vector.shape_cast %99 : vector<8xf32> to vector<8x1xf32>
    %101 = tpu.reciprocal %100 {approx = true} : vector<8x1xf32> -> vector<8x1xf32>
    %102 = vector.broadcast %101 : vector<8x1xf32> to vector<8x16xf32>
    %103 = arith.mulf %98, %102 : vector<8x16xf32>
    %cst_33 = arith.constant dense<0.000000e+00> : vector<8x8xf32>
    %104 = tpu.matmul %103, %92, %cst_33 {dimension_numbers = #tpu.dot_dimension_numbers<[1], [0], [0], [1], [0, 0, 1, 1], [], []>} : vector<8x16xf32>, vector<16x8xf32>, vector<8x8xf32> -> vector<8x8xf32>
    %105 = arith.addf %90, %104 : vector<8x8xf32>
    %106 = vector.extract_strided_slice %11 {offsets = [0, 8], sizes = [8, 8], strides = [1, 1]} : vector<8x32xf32> to vector<8x8xf32>
    %107 = vector.extract_strided_slice %88 {offsets = [0, 8], sizes = [16, 8], strides = [1, 1]} : vector<16x32xf32> to vector<16x8xf32>
    %108 = vector.extract_strided_slice %89 {offsets = [0, 8], sizes = [16, 8], strides = [1, 1]} : vector<16x32xf32> to vector<16x8xf32>
    %cst_34 = arith.constant dense<0.000000e+00> : vector<8x16xf32>
    %109 = tpu.matmul %106, %107, %cst_34 {dimension_numbers = #tpu.dot_dimension_numbers<[1], [1], [0], [0], [0, 0, 1, 0], [], []>} : vector<8x8xf32>, vector<16x8xf32>, vector<8x16xf32> -> vector<8x16xf32>
    %cst_35 = arith.constant dense<0xFF800000> : vector<8xf32>
    %110 = vector.multi_reduction <maximumf>, %109, %cst_35 [1] : vector<8x16xf32> to vector<8xf32>
    %111 = vector.shape_cast %110 : vector<8xf32> to vector<8x1xf32>
    %112 = vector.broadcast %111 : vector<8x1xf32> to vector<8x16xf32>
    %113 = arith.subf %109, %112 : vector<8x16xf32>
    %114 = math.exp %113 : vector<8x16xf32>
    %cst_36 = arith.constant dense<0.000000e+00> : vector<8xf32>
    %115 = vector.multi_reduction <add>, %114, %cst_36 [1] : vector<8x16xf32> to vector<8xf32>
    %116 = vector.shape_cast %115 : vector<8xf32> to vector<8x1xf32>
    %117 = tpu.reciprocal %116 {approx = true} : vector<8x1xf32> -> vector<8x1xf32>
    %118 = vector.broadcast %117 : vector<8x1xf32> to vector<8x16xf32>
    %119 = arith.mulf %114, %118 : vector<8x16xf32>
    %cst_37 = arith.constant dense<0.000000e+00> : vector<8x8xf32>
    %120 = tpu.matmul %119, %108, %cst_37 {dimension_numbers = #tpu.dot_dimension_numbers<[1], [0], [0], [1], [0, 0, 1, 1], [], []>} : vector<8x16xf32>, vector<16x8xf32>, vector<8x8xf32> -> vector<8x8xf32>
    %121 = arith.addf %106, %120 : vector<8x8xf32>
    %122 = vector.extract_strided_slice %11 {offsets = [0, 16], sizes = [8, 8], strides = [1, 1]} : vector<8x32xf32> to vector<8x8xf32>
    %123 = vector.extract_strided_slice %88 {offsets = [0, 16], sizes = [16, 8], strides = [1, 1]} : vector<16x32xf32> to vector<16x8xf32>
    %124 = vector.extract_strided_slice %89 {offsets = [0, 16], sizes = [16, 8], strides = [1, 1]} : vector<16x32xf32> to vector<16x8xf32>
    %cst_38 = arith.constant dense<0.000000e+00> : vector<8x16xf32>
    %125 = tpu.matmul %122, %123, %cst_38 {dimension_numbers = #tpu.dot_dimension_numbers<[1], [1], [0], [0], [0, 0, 1, 0], [], []>} : vector<8x8xf32>, vector<16x8xf32>, vector<8x16xf32> -> vector<8x16xf32>
    %cst_39 = arith.constant dense<0xFF800000> : vector<8xf32>
    %126 = vector.multi_reduction <maximumf>, %125, %cst_39 [1] : vector<8x16xf32> to vector<8xf32>
    %127 = vector.shape_cast %126 : vector<8xf32> to vector<8x1xf32>
    %128 = vector.broadcast %127 : vector<8x1xf32> to vector<8x16xf32>
    %129 = arith.subf %125, %128 : vector<8x16xf32>
    %130 = math.exp %129 : vector<8x16xf32>
    %cst_40 = arith.constant dense<0.000000e+00> : vector<8xf32>
    %131 = vector.multi_reduction <add>, %130, %cst_40 [1] : vector<8x16xf32> to vector<8xf32>
    %132 = vector.shape_cast %131 : vector<8xf32> to vector<8x1xf32>
    %133 = tpu.reciprocal %132 {approx = true} : vector<8x1xf32> -> vector<8x1xf32>
    %134 = vector.broadcast %133 : vector<8x1xf32> to vector<8x16xf32>
    %135 = arith.mulf %130, %134 : vector<8x16xf32>
    %cst_41 = arith.constant dense<0.000000e+00> : vector<8x8xf32>
    %136 = tpu.matmul %135, %124, %cst_41 {dimension_numbers = #tpu.dot_dimension_numbers<[1], [0], [0], [1], [0, 0, 1, 1], [], []>} : vector<8x16xf32>, vector<16x8xf32>, vector<8x8xf32> -> vector<8x8xf32>
    %137 = arith.addf %122, %136 : vector<8x8xf32>
    %138 = vector.extract_strided_slice %11 {offsets = [0, 24], sizes = [8, 8], strides = [1, 1]} : vector<8x32xf32> to vector<8x8xf32>
    %139 = vector.extract_strided_slice %88 {offsets = [0, 24], sizes = [16, 8], strides = [1, 1]} : vector<16x32xf32> to vector<16x8xf32>
    %140 = vector.extract_strided_slice %89 {offsets = [0, 24], sizes = [16, 8], strides = [1, 1]} : vector<16x32xf32> to vector<16x8xf32>
    %cst_42 = arith.constant dense<0.000000e+00> : vector<8x16xf32>
    %141 = tpu.matmul %138, %139, %cst_42 {dimension_numbers = #tpu.dot_dimension_numbers<[1], [1], [0], [0], [0, 0, 1, 0], [], []>} : vector<8x8xf32>, vector<16x8xf32>, vector<8x16xf32> -> vector<8x16xf32>
    %cst_43 = arith.constant dense<0xFF800000> : vector<8xf32>
    %142 = vector.multi_reduction <maximumf>, %141, %cst_43 [1] : vector<8x16xf32> to vector<8xf32>
    %143 = vector.shape_cast %142 : vector<8xf32> to vector<8x1xf32>
    %144 = vector.broadcast %143 : vector<8x1xf32> to vector<8x16xf32>
    %145 = arith.subf %141, %144 : vector<8x16xf32>
    %146 = math.exp %145 : vector<8x16xf32>
    %cst_44 = arith.constant dense<0.000000e+00> : vector<8xf32>
    %147 = vector.multi_reduction <add>, %146, %cst_44 [1] : vector<8x16xf32> to vector<8xf32>
    %148 = vector.shape_cast %147 : vector<8xf32> to vector<8x1xf32>
    %149 = tpu.reciprocal %148 {approx = true} : vector<8x1xf32> -> vector<8x1xf32>
    %150 = vector.broadcast %149 : vector<8x1xf32> to vector<8x16xf32>
    %151 = arith.mulf %146, %150 : vector<8x16xf32>
    %cst_45 = arith.constant dense<0.000000e+00> : vector<8x8xf32>
    %152 = tpu.matmul %151, %140, %cst_45 {dimension_numbers = #tpu.dot_dimension_numbers<[1], [0], [0], [1], [0, 0, 1, 1], [], []>} : vector<8x16xf32>, vector<16x8xf32>, vector<8x8xf32> -> vector<8x8xf32>
    %153 = arith.addf %138, %152 : vector<8x8xf32>
    %154 = tpu.concatenate %105, %121, %137, %153 in 1 : vector<8x8xf32>, vector<8x8xf32>, vector<8x8xf32>, vector<8x8xf32> -> vector<8x32xf32>
    %155 = tpu.concatenate %87, %154 in 0 : vector<8x32xf32>, vector<8x32xf32> -> vector<16x32xf32>
    %156 = vector.extract_strided_slice %3 {offsets = [0, 32], sizes = [32, 32], strides = [1, 1]} : vector<32x64xf32> to vector<32x32xf32>
    %cst_46 = arith.constant dense<0.000000e+00> : vector<16x32xf32>
    %157 = tpu.matmul %155, %156, %cst_46 {dimension_numbers = #tpu.dot_dimension_numbers<[1], [0], [0], [1], [0, 0, 1, 1], [], []>} : vector<16x32xf32>, vector<32x32xf32>, vector<16x32xf32> -> vector<16x32xf32>
    %158 = vector.extract_strided_slice %2 {offsets = [3, 0], sizes = [1, 32], strides = [1, 1]} : vector<8x32xf32> to vector<1x32xf32>
    %159 = vector.broadcast %158 : vector<1x32xf32> to vector<16x32xf32>
    %160 = arith.addf %157, %159 : vector<16x32xf32>
    %cst_47 = arith.constant 0.000000e+00 : f32
    %161 = vector.broadcast %cst_47 : f32 to vector<16x32xf32>
    %162 = arith.maximumf %160, %161 : vector<16x32xf32>
    %163 = arith.addf %155, %162 : vector<16x32xf32>
    %cst_48 = arith.constant dense<0.000000e+00> : vector<32x32xf32>
    %164 = tpu.matmul %0, %5, %cst_48 {dimension_numbers = #tpu.dot_dimension_numbers<[1], [0], [0], [1], [0, 0, 1, 1], [], []>} : vector<32x32xf32>, vector<32x32xf32>, vector<32x32xf32> -> vector<32x32xf32>
    %165 = vector.extract_strided_slice %2 {offsets = [4, 0], sizes = [1, 32], strides = [1, 1]} : vector<8x32xf32> to vector<1x32xf32>
    %166 = vector.broadcast %165 : vector<1x32xf32> to vector<32x32xf32>
    %167 = arith.addf %164, %166 : vector<32x32xf32>
    %168 = vector.extract_strided_slice %6 {offsets = [0, 0], sizes = [32, 64], strides = [1, 1]} : vector<32x96xf32> to vector<32x64xf32>
    %cst_49 = arith.constant dense<0.000000e+00> : vector<16x64xf32>
    %169 = tpu.matmul %163, %168, %cst_49 {dimension_numbers = #tpu.dot_dimension_numbers<[1], [0], [0], [1], [0, 0, 1, 1], [], []>} : vector<16x32xf32>, vector<32x64xf32>, vector<16x64xf32> -> vector<16x64xf32>
    %170 = vector.extract_strided_slice %169 {offsets = [0, 0], sizes = [16, 32], strides = [1, 1]} : vector<16x64xf32> to vector<16x32xf32>
    %171 = vector.extract_strided_slice %2 {offsets = [5, 0], sizes = [1, 32], strides = [1, 1]} : vector<8x32xf32> to vector<1x32xf32>
    %172 = vector.broadcast %171 : vector<1x32xf32> to vector<16x32xf32>
    %173 = arith.addf %170, %172 : vector<16x32xf32>
    %174 = vector.extract_strided_slice %169 {offsets = [0, 32], sizes = [16, 32], strides = [1, 1]} : vector<16x64xf32> to vector<16x32xf32>
    %175 = vector.extract_strided_slice %2 {offsets = [6, 0], sizes = [1, 32], strides = [1, 1]} : vector<8x32xf32> to vector<1x32xf32>
    %176 = vector.broadcast %175 : vector<1x32xf32> to vector<16x32xf32>
    %177 = arith.addf %174, %176 : vector<16x32xf32>
    %178 = vector.extract_strided_slice %167 {offsets = [0, 0], sizes = [16, 32], strides = [1, 1]} : vector<32x32xf32> to vector<16x32xf32>
    %179 = vector.extract_strided_slice %173 {offsets = [0, 0], sizes = [8, 32], strides = [1, 1]} : vector<16x32xf32> to vector<8x32xf32>
    %180 = vector.extract_strided_slice %177 {offsets = [0, 0], sizes = [8, 32], strides = [1, 1]} : vector<16x32xf32> to vector<8x32xf32>
    %181 = vector.extract_strided_slice %178 {offsets = [0, 0], sizes = [16, 8], strides = [1, 1]} : vector<16x32xf32> to vector<16x8xf32>
    %182 = vector.extract_strided_slice %179 {offsets = [0, 0], sizes = [8, 8], strides = [1, 1]} : vector<8x32xf32> to vector<8x8xf32>
    %183 = vector.extract_strided_slice %180 {offsets = [0, 0], sizes = [8, 8], strides = [1, 1]} : vector<8x32xf32> to vector<8x8xf32>
    %cst_50 = arith.constant dense<0.000000e+00> : vector<16x8xf32>
    %184 = tpu.matmul %181, %182, %cst_50 {dimension_numbers = #tpu.dot_dimension_numbers<[1], [1], [0], [0], [0, 0, 1, 0], [], []>} : vector<16x8xf32>, vector<8x8xf32>, vector<16x8xf32> -> vector<16x8xf32>
    %cst_51 = arith.constant dense<0xFF800000> : vector<16xf32>
    %185 = vector.multi_reduction <maximumf>, %184, %cst_51 [1] : vector<16x8xf32> to vector<16xf32>
    %186 = vector.shape_cast %185 : vector<16xf32> to vector<16x1xf32>
    %187 = vector.broadcast %186 : vector<16x1xf32> to vector<16x8xf32>
    %188 = arith.subf %184, %187 : vector<16x8xf32>
    %189 = math.exp %188 : vector<16x8xf32>
    %cst_52 = arith.constant dense<0.000000e+00> : vector<16xf32>
    %190 = vector.multi_reduction <add>, %189, %cst_52 [1] : vector<16x8xf32> to vector<16xf32>
    %191 = vector.shape_cast %190 : vector<16xf32> to vector<16x1xf32>
    %192 = tpu.reciprocal %191 {approx = true} : vector<16x1xf32> -> vector<16x1xf32>
    %193 = vector.broadcast %192 : vector<16x1xf32> to vector<16x8xf32>
    %194 = arith.mulf %189, %193 : vector<16x8xf32>
    %cst_53 = arith.constant dense<0.000000e+00> : vector<16x8xf32>
    %195 = tpu.matmul %194, %183, %cst_53 {dimension_numbers = #tpu.dot_dimension_numbers<[1], [0], [0], [1], [0, 0, 1, 1], [], []>} : vector<16x8xf32>, vector<8x8xf32>, vector<16x8xf32> -> vector<16x8xf32>
    %196 = arith.addf %181, %195 : vector<16x8xf32>
    %197 = vector.extract_strided_slice %178 {offsets = [0, 8], sizes = [16, 8], strides = [1, 1]} : vector<16x32xf32> to vector<16x8xf32>
    %198 = vector.extract_strided_slice %179 {offsets = [0, 8], sizes = [8, 8], strides = [1, 1]} : vector<8x32xf32> to vector<8x8xf32>
    %199 = vector.extract_strided_slice %180 {offsets = [0, 8], sizes = [8, 8], strides = [1, 1]} : vector<8x32xf32> to vector<8x8xf32>
    %cst_54 = arith.constant dense<0.000000e+00> : vector<16x8xf32>
    %200 = tpu.matmul %197, %198, %cst_54 {dimension_numbers = #tpu.dot_dimension_numbers<[1], [1], [0], [0], [0, 0, 1, 0], [], []>} : vector<16x8xf32>, vector<8x8xf32>, vector<16x8xf32> -> vector<16x8xf32>
    %cst_55 = arith.constant dense<0xFF800000> : vector<16xf32>
    %201 = vector.multi_reduction <maximumf>, %200, %cst_55 [1] : vector<16x8xf32> to vector<16xf32>
    %202 = vector.shape_cast %201 : vector<16xf32> to vector<16x1xf32>
    %203 = vector.broadcast %202 : vector<16x1xf32> to vector<16x8xf32>
    %204 = arith.subf %200, %203 : vector<16x8xf32>
    %205 = math.exp %204 : vector<16x8xf32>
    %cst_56 = arith.constant dense<0.000000e+00> : vector<16xf32>
    %206 = vector.multi_reduction <add>, %205, %cst_56 [1] : vector<16x8xf32> to vector<16xf32>
    %207 = vector.shape_cast %206 : vector<16xf32> to vector<16x1xf32>
    %208 = tpu.reciprocal %207 {approx = true} : vector<16x1xf32> -> vector<16x1xf32>
    %209 = vector.broadcast %208 : vector<16x1xf32> to vector<16x8xf32>
    %210 = arith.mulf %205, %209 : vector<16x8xf32>
    %cst_57 = arith.constant dense<0.000000e+00> : vector<16x8xf32>
    %211 = tpu.matmul %210, %199, %cst_57 {dimension_numbers = #tpu.dot_dimension_numbers<[1], [0], [0], [1], [0, 0, 1, 1], [], []>} : vector<16x8xf32>, vector<8x8xf32>, vector<16x8xf32> -> vector<16x8xf32>
    %212 = arith.addf %197, %211 : vector<16x8xf32>
    %213 = vector.extract_strided_slice %178 {offsets = [0, 16], sizes = [16, 8], strides = [1, 1]} : vector<16x32xf32> to vector<16x8xf32>
    %214 = vector.extract_strided_slice %179 {offsets = [0, 16], sizes = [8, 8], strides = [1, 1]} : vector<8x32xf32> to vector<8x8xf32>
    %215 = vector.extract_strided_slice %180 {offsets = [0, 16], sizes = [8, 8], strides = [1, 1]} : vector<8x32xf32> to vector<8x8xf32>
    %cst_58 = arith.constant dense<0.000000e+00> : vector<16x8xf32>
    %216 = tpu.matmul %213, %214, %cst_58 {dimension_numbers = #tpu.dot_dimension_numbers<[1], [1], [0], [0], [0, 0, 1, 0], [], []>} : vector<16x8xf32>, vector<8x8xf32>, vector<16x8xf32> -> vector<16x8xf32>
    %cst_59 = arith.constant dense<0xFF800000> : vector<16xf32>
    %217 = vector.multi_reduction <maximumf>, %216, %cst_59 [1] : vector<16x8xf32> to vector<16xf32>
    %218 = vector.shape_cast %217 : vector<16xf32> to vector<16x1xf32>
    %219 = vector.broadcast %218 : vector<16x1xf32> to vector<16x8xf32>
    %220 = arith.subf %216, %219 : vector<16x8xf32>
    %221 = math.exp %220 : vector<16x8xf32>
    %cst_60 = arith.constant dense<0.000000e+00> : vector<16xf32>
    %222 = vector.multi_reduction <add>, %221, %cst_60 [1] : vector<16x8xf32> to vector<16xf32>
    %223 = vector.shape_cast %222 : vector<16xf32> to vector<16x1xf32>
    %224 = tpu.reciprocal %223 {approx = true} : vector<16x1xf32> -> vector<16x1xf32>
    %225 = vector.broadcast %224 : vector<16x1xf32> to vector<16x8xf32>
    %226 = arith.mulf %221, %225 : vector<16x8xf32>
    %cst_61 = arith.constant dense<0.000000e+00> : vector<16x8xf32>
    %227 = tpu.matmul %226, %215, %cst_61 {dimension_numbers = #tpu.dot_dimension_numbers<[1], [0], [0], [1], [0, 0, 1, 1], [], []>} : vector<16x8xf32>, vector<8x8xf32>, vector<16x8xf32> -> vector<16x8xf32>
    %228 = arith.addf %213, %227 : vector<16x8xf32>
    %229 = vector.extract_strided_slice %178 {offsets = [0, 24], sizes = [16, 8], strides = [1, 1]} : vector<16x32xf32> to vector<16x8xf32>
    %230 = vector.extract_strided_slice %179 {offsets = [0, 24], sizes = [8, 8], strides = [1, 1]} : vector<8x32xf32> to vector<8x8xf32>
    %231 = vector.extract_strided_slice %180 {offsets = [0, 24], sizes = [8, 8], strides = [1, 1]} : vector<8x32xf32> to vector<8x8xf32>
    %cst_62 = arith.constant dense<0.000000e+00> : vector<16x8xf32>
    %232 = tpu.matmul %229, %230, %cst_62 {dimension_numbers = #tpu.dot_dimension_numbers<[1], [1], [0], [0], [0, 0, 1, 0], [], []>} : vector<16x8xf32>, vector<8x8xf32>, vector<16x8xf32> -> vector<16x8xf32>
    %cst_63 = arith.constant dense<0xFF800000> : vector<16xf32>
    %233 = vector.multi_reduction <maximumf>, %232, %cst_63 [1] : vector<16x8xf32> to vector<16xf32>
    %234 = vector.shape_cast %233 : vector<16xf32> to vector<16x1xf32>
    %235 = vector.broadcast %234 : vector<16x1xf32> to vector<16x8xf32>
    %236 = arith.subf %232, %235 : vector<16x8xf32>
    %237 = math.exp %236 : vector<16x8xf32>
    %cst_64 = arith.constant dense<0.000000e+00> : vector<16xf32>
    %238 = vector.multi_reduction <add>, %237, %cst_64 [1] : vector<16x8xf32> to vector<16xf32>
    %239 = vector.shape_cast %238 : vector<16xf32> to vector<16x1xf32>
    %240 = tpu.reciprocal %239 {approx = true} : vector<16x1xf32> -> vector<16x1xf32>
    %241 = vector.broadcast %240 : vector<16x1xf32> to vector<16x8xf32>
    %242 = arith.mulf %237, %241 : vector<16x8xf32>
    %cst_65 = arith.constant dense<0.000000e+00> : vector<16x8xf32>
    %243 = tpu.matmul %242, %231, %cst_65 {dimension_numbers = #tpu.dot_dimension_numbers<[1], [0], [0], [1], [0, 0, 1, 1], [], []>} : vector<16x8xf32>, vector<8x8xf32>, vector<16x8xf32> -> vector<16x8xf32>
    %244 = arith.addf %229, %243 : vector<16x8xf32>
    %245 = tpu.concatenate %196, %212, %228, %244 in 1 : vector<16x8xf32>, vector<16x8xf32>, vector<16x8xf32>, vector<16x8xf32> -> vector<16x32xf32>
    %246 = vector.extract_strided_slice %167 {offsets = [16, 0], sizes = [16, 32], strides = [1, 1]} : vector<32x32xf32> to vector<16x32xf32>
    %247 = vector.extract_strided_slice %173 {offsets = [8, 0], sizes = [8, 32], strides = [1, 1]} : vector<16x32xf32> to vector<8x32xf32>
    %248 = vector.extract_strided_slice %177 {offsets = [8, 0], sizes = [8, 32], strides = [1, 1]} : vector<16x32xf32> to vector<8x32xf32>
    %249 = vector.extract_strided_slice %246 {offsets = [0, 0], sizes = [16, 8], strides = [1, 1]} : vector<16x32xf32> to vector<16x8xf32>
    %250 = vector.extract_strided_slice %247 {offsets = [0, 0], sizes = [8, 8], strides = [1, 1]} : vector<8x32xf32> to vector<8x8xf32>
    %251 = vector.extract_strided_slice %248 {offsets = [0, 0], sizes = [8, 8], strides = [1, 1]} : vector<8x32xf32> to vector<8x8xf32>
    %cst_66 = arith.constant dense<0.000000e+00> : vector<16x8xf32>
    %252 = tpu.matmul %249, %250, %cst_66 {dimension_numbers = #tpu.dot_dimension_numbers<[1], [1], [0], [0], [0, 0, 1, 0], [], []>} : vector<16x8xf32>, vector<8x8xf32>, vector<16x8xf32> -> vector<16x8xf32>
    %cst_67 = arith.constant dense<0xFF800000> : vector<16xf32>
    %253 = vector.multi_reduction <maximumf>, %252, %cst_67 [1] : vector<16x8xf32> to vector<16xf32>
    %254 = vector.shape_cast %253 : vector<16xf32> to vector<16x1xf32>
    %255 = vector.broadcast %254 : vector<16x1xf32> to vector<16x8xf32>
    %256 = arith.subf %252, %255 : vector<16x8xf32>
    %257 = math.exp %256 : vector<16x8xf32>
    %cst_68 = arith.constant dense<0.000000e+00> : vector<16xf32>
    %258 = vector.multi_reduction <add>, %257, %cst_68 [1] : vector<16x8xf32> to vector<16xf32>
    %259 = vector.shape_cast %258 : vector<16xf32> to vector<16x1xf32>
    %260 = tpu.reciprocal %259 {approx = true} : vector<16x1xf32> -> vector<16x1xf32>
    %261 = vector.broadcast %260 : vector<16x1xf32> to vector<16x8xf32>
    %262 = arith.mulf %257, %261 : vector<16x8xf32>
    %cst_69 = arith.constant dense<0.000000e+00> : vector<16x8xf32>
    %263 = tpu.matmul %262, %251, %cst_69 {dimension_numbers = #tpu.dot_dimension_numbers<[1], [0], [0], [1], [0, 0, 1, 1], [], []>} : vector<16x8xf32>, vector<8x8xf32>, vector<16x8xf32> -> vector<16x8xf32>
    %264 = arith.addf %249, %263 : vector<16x8xf32>
    %265 = vector.extract_strided_slice %246 {offsets = [0, 8], sizes = [16, 8], strides = [1, 1]} : vector<16x32xf32> to vector<16x8xf32>
    %266 = vector.extract_strided_slice %247 {offsets = [0, 8], sizes = [8, 8], strides = [1, 1]} : vector<8x32xf32> to vector<8x8xf32>
    %267 = vector.extract_strided_slice %248 {offsets = [0, 8], sizes = [8, 8], strides = [1, 1]} : vector<8x32xf32> to vector<8x8xf32>
    %cst_70 = arith.constant dense<0.000000e+00> : vector<16x8xf32>
    %268 = tpu.matmul %265, %266, %cst_70 {dimension_numbers = #tpu.dot_dimension_numbers<[1], [1], [0], [0], [0, 0, 1, 0], [], []>} : vector<16x8xf32>, vector<8x8xf32>, vector<16x8xf32> -> vector<16x8xf32>
    %cst_71 = arith.constant dense<0xFF800000> : vector<16xf32>
    %269 = vector.multi_reduction <maximumf>, %268, %cst_71 [1] : vector<16x8xf32> to vector<16xf32>
    %270 = vector.shape_cast %269 : vector<16xf32> to vector<16x1xf32>
    %271 = vector.broadcast %270 : vector<16x1xf32> to vector<16x8xf32>
    %272 = arith.subf %268, %271 : vector<16x8xf32>
    %273 = math.exp %272 : vector<16x8xf32>
    %cst_72 = arith.constant dense<0.000000e+00> : vector<16xf32>
    %274 = vector.multi_reduction <add>, %273, %cst_72 [1] : vector<16x8xf32> to vector<16xf32>
    %275 = vector.shape_cast %274 : vector<16xf32> to vector<16x1xf32>
    %276 = tpu.reciprocal %275 {approx = true} : vector<16x1xf32> -> vector<16x1xf32>
    %277 = vector.broadcast %276 : vector<16x1xf32> to vector<16x8xf32>
    %278 = arith.mulf %273, %277 : vector<16x8xf32>
    %cst_73 = arith.constant dense<0.000000e+00> : vector<16x8xf32>
    %279 = tpu.matmul %278, %267, %cst_73 {dimension_numbers = #tpu.dot_dimension_numbers<[1], [0], [0], [1], [0, 0, 1, 1], [], []>} : vector<16x8xf32>, vector<8x8xf32>, vector<16x8xf32> -> vector<16x8xf32>
    %280 = arith.addf %265, %279 : vector<16x8xf32>
    %281 = vector.extract_strided_slice %246 {offsets = [0, 16], sizes = [16, 8], strides = [1, 1]} : vector<16x32xf32> to vector<16x8xf32>
    %282 = vector.extract_strided_slice %247 {offsets = [0, 16], sizes = [8, 8], strides = [1, 1]} : vector<8x32xf32> to vector<8x8xf32>
    %283 = vector.extract_strided_slice %248 {offsets = [0, 16], sizes = [8, 8], strides = [1, 1]} : vector<8x32xf32> to vector<8x8xf32>
    %cst_74 = arith.constant dense<0.000000e+00> : vector<16x8xf32>
    %284 = tpu.matmul %281, %282, %cst_74 {dimension_numbers = #tpu.dot_dimension_numbers<[1], [1], [0], [0], [0, 0, 1, 0], [], []>} : vector<16x8xf32>, vector<8x8xf32>, vector<16x8xf32> -> vector<16x8xf32>
    %cst_75 = arith.constant dense<0xFF800000> : vector<16xf32>
    %285 = vector.multi_reduction <maximumf>, %284, %cst_75 [1] : vector<16x8xf32> to vector<16xf32>
    %286 = vector.shape_cast %285 : vector<16xf32> to vector<16x1xf32>
    %287 = vector.broadcast %286 : vector<16x1xf32> to vector<16x8xf32>
    %288 = arith.subf %284, %287 : vector<16x8xf32>
    %289 = math.exp %288 : vector<16x8xf32>
    %cst_76 = arith.constant dense<0.000000e+00> : vector<16xf32>
    %290 = vector.multi_reduction <add>, %289, %cst_76 [1] : vector<16x8xf32> to vector<16xf32>
    %291 = vector.shape_cast %290 : vector<16xf32> to vector<16x1xf32>
    %292 = tpu.reciprocal %291 {approx = true} : vector<16x1xf32> -> vector<16x1xf32>
    %293 = vector.broadcast %292 : vector<16x1xf32> to vector<16x8xf32>
    %294 = arith.mulf %289, %293 : vector<16x8xf32>
    %cst_77 = arith.constant dense<0.000000e+00> : vector<16x8xf32>
    %295 = tpu.matmul %294, %283, %cst_77 {dimension_numbers = #tpu.dot_dimension_numbers<[1], [0], [0], [1], [0, 0, 1, 1], [], []>} : vector<16x8xf32>, vector<8x8xf32>, vector<16x8xf32> -> vector<16x8xf32>
    %296 = arith.addf %281, %295 : vector<16x8xf32>
    %297 = vector.extract_strided_slice %246 {offsets = [0, 24], sizes = [16, 8], strides = [1, 1]} : vector<16x32xf32> to vector<16x8xf32>
    %298 = vector.extract_strided_slice %247 {offsets = [0, 24], sizes = [8, 8], strides = [1, 1]} : vector<8x32xf32> to vector<8x8xf32>
    %299 = vector.extract_strided_slice %248 {offsets = [0, 24], sizes = [8, 8], strides = [1, 1]} : vector<8x32xf32> to vector<8x8xf32>
    %cst_78 = arith.constant dense<0.000000e+00> : vector<16x8xf32>
    %300 = tpu.matmul %297, %298, %cst_78 {dimension_numbers = #tpu.dot_dimension_numbers<[1], [1], [0], [0], [0, 0, 1, 0], [], []>} : vector<16x8xf32>, vector<8x8xf32>, vector<16x8xf32> -> vector<16x8xf32>
    %cst_79 = arith.constant dense<0xFF800000> : vector<16xf32>
    %301 = vector.multi_reduction <maximumf>, %300, %cst_79 [1] : vector<16x8xf32> to vector<16xf32>
    %302 = vector.shape_cast %301 : vector<16xf32> to vector<16x1xf32>
    %303 = vector.broadcast %302 : vector<16x1xf32> to vector<16x8xf32>
    %304 = arith.subf %300, %303 : vector<16x8xf32>
    %305 = math.exp %304 : vector<16x8xf32>
    %cst_80 = arith.constant dense<0.000000e+00> : vector<16xf32>
    %306 = vector.multi_reduction <add>, %305, %cst_80 [1] : vector<16x8xf32> to vector<16xf32>
    %307 = vector.shape_cast %306 : vector<16xf32> to vector<16x1xf32>
    %308 = tpu.reciprocal %307 {approx = true} : vector<16x1xf32> -> vector<16x1xf32>
    %309 = vector.broadcast %308 : vector<16x1xf32> to vector<16x8xf32>
    %310 = arith.mulf %305, %309 : vector<16x8xf32>
    %cst_81 = arith.constant dense<0.000000e+00> : vector<16x8xf32>
    %311 = tpu.matmul %310, %299, %cst_81 {dimension_numbers = #tpu.dot_dimension_numbers<[1], [0], [0], [1], [0, 0, 1, 1], [], []>} : vector<16x8xf32>, vector<8x8xf32>, vector<16x8xf32> -> vector<16x8xf32>
    %312 = arith.addf %297, %311 : vector<16x8xf32>
    %313 = tpu.concatenate %264, %280, %296, %312 in 1 : vector<16x8xf32>, vector<16x8xf32>, vector<16x8xf32>, vector<16x8xf32> -> vector<16x32xf32>
    %314 = tpu.concatenate %245, %313 in 0 : vector<16x32xf32>, vector<16x32xf32> -> vector<32x32xf32>
    %315 = vector.extract_strided_slice %6 {offsets = [0, 64], sizes = [32, 32], strides = [1, 1]} : vector<32x96xf32> to vector<32x32xf32>
    %cst_82 = arith.constant dense<0.000000e+00> : vector<32x32xf32>
    %316 = tpu.matmul %314, %315, %cst_82 {dimension_numbers = #tpu.dot_dimension_numbers<[1], [0], [0], [1], [0, 0, 1, 1], [], []>} : vector<32x32xf32>, vector<32x32xf32>, vector<32x32xf32> -> vector<32x32xf32>
    %317 = vector.extract_strided_slice %2 {offsets = [7, 0], sizes = [1, 32], strides = [1, 1]} : vector<8x32xf32> to vector<1x32xf32>
    %318 = vector.broadcast %317 : vector<1x32xf32> to vector<32x32xf32>
    %319 = arith.addf %316, %318 : vector<32x32xf32>
    %cst_83 = arith.constant 0.000000e+00 : f32
    %320 = vector.broadcast %cst_83 : f32 to vector<32x32xf32>
    %321 = arith.maximumf %319, %320 : vector<32x32xf32>
    %322 = arith.addf %314, %321 : vector<32x32xf32>
    %c0_84 = arith.constant 0 : index
    %c0_85 = arith.constant 0 : index
    %323 = vector.load %arg7[%c0_84, %c0_85] : memref<32x32xf32, #tpu.memory_space<vmem>>, vector<32x32xf32>
    tpu.vector_store %arg7[%c0_84, %c0_85], %322 {strides = array<i32>} : memref<32x32xf32, #tpu.memory_space<vmem>>, vector<32x32xf32>,
    return
  }
}

</mosaic_0001>

<bundles_post_ra>
// kernel: tpu_custom_call.1
= control target key start
LH: loop header
LB: loop body
LE: loop exit
PB: predicated region body
PF: predicated region fallthrough
CT: control target
= control target key end

     0   :  { %12 = vsyncpa [#allocation3], 0  ;;  %s5572_s0 = inlined_call_operand.hbm [shape: f32[8,32], index: 0, kind: input, shape index: {}]   ;;  %s5573_s1 = inlined_call_operand.hbm [shape: f32[32,32], index: 1, kind: input, shape index: {}]   ;;  %s5574_s2 = inlined_call_operand.hbm [shape: f32[32,64], index: 2, kind: input, shape index: {}]   ;;  %s5575_s3 = inlined_call_operand.hbm [shape: f32[32,64], index: 3, kind: input, shape index: {}]   ;;  %s5576_s4 = inlined_call_operand.hbm [shape: f32[32,32], index: 4, kind: input, shape index: {}]   ;;  %s5577_s5 = inlined_call_operand.hbm [shape: f32[32,96], index: 5, kind: input, shape index: {}]   ;;  %s5578_s6 = inlined_call_operand.vmem [shape: f32[8,32], index: 6, kind: input, shape index: {}]   ;;  %s5579_s7 = inlined_call_operand.hbm [shape: f32[32,32], index: 7, kind: output, shape index: {}]  }
   0x1   :  { %13 = vsyncpa [#allocation6], 0 }
   0x2   :  { %14 = vsyncpa [#allocation9], 0 }
   0x3   :  { %15 = vsyncpa [#allocation12], 0 }
   0x4   :  { %16 = vsyncpa [#allocation4], 0  ;;  %s4749_s24 = smov [#allocation5]   ;;  %s4585_s28 = scalar_lea.hbm %s5573_s1, 512 }
   0x5   :  { %s32_s25 = sshll.u32 %s4749_s24, 4  ;;  %p4586_p0 = scmp.ne.s32.totalorder %s5573_s1, %s4585_s28  ;;  %s33_s25 = int_to_ptr.vmem [resolvable:$true] %s32_s25 }
   0x6   :  { %p4589_p1 = scmp.lt.u32.totalorder %s4585_s28, %s5573_s1 }
   0x8   :  { %p4591_p2 = pnand %p4589_p1, %p4586_p0 }
   0xa   :  { %4594 = shalt.err (!%p4591_p2)
}
   0xb   :  { %s4595_s10 = scalar_lea.vmem %s33_s25, 512  ;;  %p4600_p4 = scmp.lt.s32.totalorder %s33_s25, %s33_s25 }
   0xc   :  { %p4596_p3 = scmp.ne.s32.totalorder %s33_s25, %s4595_s10  ;;  %p4601_p5 = scmp.lt.s32.totalorder %s4595_s10, %s4595_s10 }
   0xe   :  { %p4602_p6 = por %p4601_p5, %p4600_p4 }
  0x10   :  { %p4603_p7 = pnand %p4602_p6, %p4596_p3 }
  0x12   :  { %4606 = shalt.err (!%p4603_p7)
}
  0x13   :  { %s4750_s11 = smov 128   ;;  %s4751_s12 = smov 8  }
  0x14   :  { %38 = dma.hbm_to_vmem [thread:$0]  %s5573_s1, 512, %s33_s25, [#allocation6], %s4750_s11, %s4750_s11, %s4751_s12  }
  0x15   :  { %s4752_s15 = smov [#allocation8]   ;;  %s4753_s17 = smov [#allocation2]  }
  0x16   :  { %s56_s16 = sshll.u32 %s4752_s15, 4  ;;  %s23_s18 = sshll.u32 %s4753_s17, 4  ;;  %s57_s16 = int_to_ptr.vmem [resolvable:$true] %s56_s16  ;;  %s24_s18 = int_to_ptr.vmem [resolvable:$true] %s23_s18 }
  0x17   :  { %s4607_s21 = scalar_lea.hbm %s5575_s3, 512 }
  0x18   :  { %p4608_p8 = scmp.ne.s32.totalorder %s5575_s3, %s4607_s21  ;;  %p4611_p9 = scmp.lt.u32.totalorder %s4607_s21, %s5575_s3 }
  0x1a   :  { %p4613_p10 = pnand %p4611_p9, %p4608_p8 }
  0x1c   :  { %4616 = shalt.err (!%p4613_p10)
}
  0x1d   :  { %s4617_s1 = scalar_lea.vmem %s57_s16, 512  ;;  %p4622_p12 = scmp.lt.s32.totalorder %s57_s16, %s57_s16 }
  0x1e   :  { %p4618_p11 = scmp.ne.s32.totalorder %s57_s16, %s4617_s1  ;;  %p4623_p13 = scmp.lt.s32.totalorder %s4617_s1, %s4617_s1 }
  0x20   :  { %p4624_p0 = por %p4623_p13, %p4622_p12 }
  0x22   :  { %p4625_p1 = pnand %p4624_p0, %p4618_p11 }
  0x24   :  { %4628 = shalt.err (!%p4625_p1)
}
  0x25   :  { %62 = dma.hbm_to_vmem [thread:$0]  %s5575_s3, 512, %s57_s16, [#allocation9], %s4750_s11, %s4750_s11, %s4751_s12  }
  0x26   :  { %s4629_s30 = scalar_lea.hbm %s5572_s0, 128 }
  0x27   :  { %p4630_p2 = scmp.ne.s32.totalorder %s5572_s0, %s4629_s30  ;;  %p4633_p3 = scmp.lt.u32.totalorder %s4629_s30, %s5572_s0 }
  0x29   :  { %p4635_p4 = pnand %p4633_p3, %p4630_p2 }
  0x2b   :  { %4638 = shalt.err (!%p4635_p4)
}
  0x2c   :  { %s4639_s14 = scalar_lea.vmem %s24_s18, 128  ;;  %p4644_p6 = scmp.lt.s32.totalorder %s24_s18, %s24_s18 }
  0x2d   :  { %p4640_p5 = scmp.ne.s32.totalorder %s24_s18, %s4639_s14  ;;  %p4645_p7 = scmp.lt.s32.totalorder %s4639_s14, %s4639_s14 }
  0x2f   :  { %p4646_p8 = por %p4645_p7, %p4644_p6 }
  0x31   :  { %p4647_p9 = pnand %p4646_p8, %p4640_p5 }
  0x33   :  { %4650 = shalt.err (!%p4647_p9)
}
  0x34   :  { %26 = dma.hbm_to_vmem [thread:$0]  %s5572_s0, 128, %s24_s18, [#allocation3]  }
  0x35   :  { %s4754_s16 = smov [#allocation7]   ;;  %s4755_s19 = smov [#allocation10]  }
  0x36   :  { %s44_s17 = sshll.u32 %s4754_s16, 4  ;;  %s68_s20 = sshll.u32 %s4755_s19, 4  ;;  %s45_s17 = int_to_ptr.vmem [resolvable:$true] %s44_s17  ;;  %s69_s20 = int_to_ptr.vmem [resolvable:$true] %s68_s20 }
  0x37   :  { %s4651_s23 = scalar_lea.hbm %s5574_s2, 512 }
  0x38   :  { %p4652_p10 = scmp.ne.s32.totalorder %s5574_s2, %s4651_s23  ;;  %p4655_p11 = scmp.lt.u32.totalorder %s4651_s23, %s5574_s2 }
  0x3a   :  { %p4657_p12 = pnand %p4655_p11, %p4652_p10 }
  0x3c   :  { %4660 = shalt.err (!%p4657_p12)
}
  0x3d   :  { %s4661_s0 = scalar_lea.vmem %s45_s17, 512  ;;  %p4666_p0 = scmp.lt.s32.totalorder %s45_s17, %s45_s17 }
  0x3e   :  { %p4662_p13 = scmp.ne.s32.totalorder %s45_s17, %s4661_s0  ;;  %p4667_p1 = scmp.lt.s32.totalorder %s4661_s0, %s4661_s0 }
  0x40   :  { %p4668_p2 = por %p4667_p1, %p4666_p0 }
  0x42   :  { %p4669_p3 = pnand %p4668_p2, %p4662_p13 }
  0x44   :  { %4672 = shalt.err (!%p4669_p3)
}
  0x45   :  { %50 = dma.hbm_to_vmem [thread:$0]  %s5574_s2, 512, %s45_s17, [#allocation6], %s4750_s11, %s4750_s11, %s4751_s12  }
  0x46   :  { %s4673_s30 = scalar_lea.hbm %s5576_s4, 512 }
  0x47   :  { %p4674_p4 = scmp.ne.s32.totalorder %s5576_s4, %s4673_s30  ;;  %p4677_p5 = scmp.lt.u32.totalorder %s4673_s30, %s5576_s4 }
  0x49   :  { %p4679_p6 = pnand %p4677_p5, %p4674_p4 }
  0x4b   :  { %4682 = shalt.err (!%p4679_p6)
}
  0x4c   :  { %s4683_s14 = scalar_lea.vmem %s69_s20, 512  ;;  %p4688_p8 = scmp.lt.s32.totalorder %s69_s20, %s69_s20 }
  0x4d   :  { %p4684_p7 = scmp.ne.s32.totalorder %s69_s20, %s4683_s14  ;;  %p4689_p9 = scmp.lt.s32.totalorder %s4683_s14, %s4683_s14 }
  0x4f   :  { %p4690_p10 = por %p4689_p9, %p4688_p8 }
  0x51   :  { %p4691_p11 = pnand %p4690_p10, %p4684_p7 }
  0x53   :  { %4694 = shalt.err (!%p4691_p11)
}
  0x54   :  { %74 = dma.hbm_to_vmem [thread:$0]  %s5576_s4, 512, %s69_s20, [#allocation9], %s4750_s11, %s4750_s11, %s4751_s12  }
  0x55   :  { %s4756_s15 = smov [#allocation11]   ;;  %s4695_s21 = scalar_lea.hbm %s5577_s5, 512 }
  0x56   :  { %s80_s16 = sshll.u32 %s4756_s15, 4  ;;  %p4696_p12 = scmp.ne.s32.totalorder %s5577_s5, %s4695_s21  ;;  %s81_s16 = int_to_ptr.vmem [resolvable:$true] %s80_s16 }
  0x57   :  { %p4699_p13 = scmp.lt.u32.totalorder %s4695_s21, %s5577_s5 }
  0x59   :  { %p4701_p0 = pnand %p4699_p13, %p4696_p12 }
  0x5b   :  { %4704 = shalt.err (!%p4701_p0)
}
  0x5c   :  { %s4705_s1 = scalar_lea.vmem %s81_s16, 512  ;;  %p4710_p2 = scmp.lt.s32.totalorder %s81_s16, %s81_s16 }
  0x5d   :  { %p4706_p1 = scmp.ne.s32.totalorder %s81_s16, %s4705_s1  ;;  %p4711_p3 = scmp.lt.s32.totalorder %s4705_s1, %s4705_s1 }
  0x5f   :  { %p4712_p4 = por %p4711_p3, %p4710_p2 }
  0x61   :  { %p4713_p5 = pnand %p4712_p4, %p4706_p1 }
  0x63   :  { %4716 = shalt.err (!%p4713_p5)
}
  0x64   :  { %86 = dma.hbm_to_vmem [thread:$0]  %s5577_s5, 512, %s81_s16, [#allocation12], %s4750_s11, %s4750_s11, %s4751_s12  }
  0x65   :  { %4739 = dma.done.wait [#allocation3], 128  }
  0x66   :  { %4740 = vsyncadd [#allocation3], 4294967168 }
  0x67   :  { %4741 = dma.done.wait [#allocation6], 1024  }
  0x68   :  { %4742 = vsyncadd [#allocation6], 4294966272 }
  0x69   :  { %4743 = dma.done.wait [#allocation9], 1024  }
  0x6a   :  { %4744 = vsyncadd [#allocation9], 4294966272 }
  0x6b   :  { %4745 = dma.done.wait [#allocation12], 512  }
  0x6c   :  { %4746 = vsyncadd [#allocation12], 4294966784  ;;  %v4757_v0 = vmov 0.0|0.0   ;;  %vm4758_vm0 = vmmov 0   ;;  %v4759_v1 = vmov 0.0   ;;  %vm133_vm1 = vcmask 261120  }
  0x6d   :  { %4273 = vmatprep.subr.bf16.mxu0 %v4757_v0  ;;  %4014 = vmatprep.mubr.msk.f32.mxu0 %vm4758_vm0, %v4759_v1  ;;  %v117_v2 = vld [vmem:[#allocation8] sm:$0xff]  ;;  %v118_v3 = vld [vmem:[#allocation8 + $0x8] sm:$0xff]  ;;  %v119_v4 = vld [vmem:[#allocation8 + $0x10] sm:$0xff]  ;;  %v129_v20 = vlaneseq  ;;  %vm324_vm2 = vcmask 64512   ;;  %s4760_s0 = smov 120   ;;  %s4761_s18 = smov 32  }
  0x6e   :  { %v4279_v5 = vpack.c.bf16 %v118_v3, %v117_v2  ;;  %v120_v6 = vld [vmem:[#allocation8 + $0x18] sm:$0xff]  ;;  %v4902_v7 = vld [vmem:[#allocation5] sm:$0xff]  ;;  %v4908_v10 = vld [vmem:[#allocation7 + $0x8] sm:$0xff]  ;;  %vm404_vm4 = vcmask 130048   ;;  %s4762_s27 = smov 96   ;;  %s4763_s28 = smov 88  }
  0x6f   :  { %v4904_v8 = vld [vmem:[#allocation7] sm:$0xff]  ;;  %v4283_v9 = vpack.c.bf16 %v120_v6, %v119_v4  ;;  %4025 = vmatprep.mubr.msk.f32.mxu1 %vm133_vm1, %v4902_v7  ;;  %v4910_v11 = vld [vmem:[#allocation7 + $0x10] sm:$0xff]  ;;  %v4916_v14 = vld [vmem:[#allocation7 + $0x18] sm:$0xff]  ;;  %v4940_v21 = vshrl.u32 %v129_v20, 7  ;;  %s4764_s29 = smov 112   ;;  %s4765_s30 = smov 80  }
  0x70   :  { %4280 = vmatprep.subr.bf16.mxu1 %v4279_v5  ;;  %v4468_v12 = vpack.i.bf16 %v4908_v10, %v4904_v8  ;;  %v4274_v13 = vpack.c.bf16 %v4908_v10, %v4904_v8  ;;  %v4277_v15 = vpack.c.bf16 %v4916_v14, %v4910_v11  ;;  %v4921_v16 = vld [vmem:[#allocation5 + $0x8] sm:$0xff]  ;;  %v111_v17 = vld [vmem:[#allocation2] sm:$0xff]  ;;  %v4930_v18 = vld [vmem:[#allocation5 + $0x10] sm:$0xff]  ;;  %s4766_s8 = smov 104   ;;  %s4767_s9 = smov 72   ;;  %vm1031_vm5 = vcmask 195584  }
  0x71   :  { %4282 = vmatpush3.bf16.msra.mxu1 %v4279_v5  ;;  %v4932_v19 = vld [vmem:[#allocation5 + $0x18] sm:$0xff]  ;;  %v306_v22 = vsub.s32 1, %v4940_v21  ;;  %v131_v25 = vsub.s32 0, %v4940_v21  ;;  %vm4957_vm3 = vmpackc.low %vm324_vm2, %vm324_vm2  ;;  %v314_v37 = vsub.s32 2, %v4940_v21  ;;  %s4768_s10 = smov 16   ;;  %s4769_s13 = smov 24  }
  0x72   :  { %4284 = vmatprep.subr.bf16.mxu1 %v4283_v9  ;;  %4275 = vmatpush3.bf16.msra.mxu0 %v4274_v13  ;;  %v4946_v23 = vld [vmem:[%s5578_s6] sm:$0xff]  ;;  %s4771_s3 = smov [#allocation13]  }
  0x73   :  { %4276 = vmatprep.subr.bf16.mxu0 %v4757_v0  ;;  %v4949_v24 = vrot.slane %v4946_v23, %v306_v22  ;;  %v132_v31 = vrot.slane %v4946_v23, %v131_v25  ;;  %v315_v38 = vrot.slane %v4946_v23, %v314_v37  ;;  %s3765_s15 = sshll.u32 %s4771_s3, 4  ;;  %s3766_s15 = int_to_ptr.vmem [resolvable:$true] %s3765_s15 }
  0x74   :  { %s4717_s16 = scalar_lea.vmem %s3766_s15, 512  ;;  %p4722_p7 = scmp.lt.s32.totalorder %s3766_s15, %s3766_s15 }
  0x75   :  { %4286 = vmatpush3.bf16.msra.mxu1 %v4283_v9  ;;  %p4718_p6 = scmp.ne.s32.totalorder %s3766_s15, %s4717_s16  ;;  %p4723_p8 = scmp.lt.s32.totalorder %s4717_s16, %s4717_s16 }
  0x76   :  { %4278 = vmatpush3.bf16.msra.mxu0 %v4277_v15  ;;  %4287 = vmatprep.subr.bf16.mxu1 %v4757_v0 }
  0x77   :  { %4294 = vmatprep.subr.bf16.mxu0 %v4757_v0  ;;  %p4724_p9 = por %p4723_p8, %p4722_p7 }
  0x78   :  { %4026 = vmatmul.mubr.msk.f32.vlgmr.msra.gmra.mrb[0].mxu1 %vm133_vm1, %v4921_v16 }
  0x79   :  { %4015 = vmatmul.mubr.msk.f32.vlgmr.msra.gmra.mrb[0].mxu0 %vm133_vm1, %v111_v17  ;;  %4028 = vmatprep.mubr.msk.f32.mxu1 %vm133_vm1, %v4930_v18  ;;  %p4725_p10 = pnand %p4724_p9, %p4718_p6 }
  0x7a   :  { %4049 = vmatprep.mubr.msk.f32.mxu0 %vm4758_vm0, %v4759_v1 }
  0x7c   :  { %4029 = vmatmul.mubr.msk.f32.gmra.mrb[2].mxu1 %vm133_vm1, %v4932_v19 }
  0x7d   :  { %4035 = vmatprep.mubr.msk.f32.mxu1 %vm4758_vm0, %v4759_v1 }
 0x14b   :  { %v4027_v26 = vpop.f32.mrb[0].mxu1 }
 0x14c   :  { %v309_v27 = vadd.f32 %v4027_v26, %v4949_v24  ;;  %v285_v28 = vpop.f32.mrb[1].mxu1  ;;  %v203_v29 = vpop.f32.mrb[0].mxu0 }
 0x14d   :  { %v308_v30 = vadd.f32 %v4949_v24, %v285_v28  ;;  %v4016_v32 = vpop.f32.mrb[1].mxu0  ;;  %v4967_v36 = vadd.f32 %v203_v29, %v132_v31 }
 0x14f   :  { %v4288_v34 = vpack.c.bf16 %v309_v27, %v308_v30  ;;  %v4961_v35 = vpack.i.bf16 %v309_v27, %v308_v30  ;;  %v4979_v39 = vpop.f32.mrb[2].mxu1 }
 0x150   :  { %v4981_v40 = vpop.f32.mrb[3].mxu1 }
 0x151   :  { %4399 = vrot.lane.b32.xlu0 %v4961_v35, %s4760_s0  ;;  %4290 = vmatpush3.bf16.xpose.msk.msra.mxu1 %vm4957_vm3, %v4288_v34 }
 0x152   :  { %4291 = vmatprep.subr.bf16.mxu1 %v4757_v0 }
 0x155   :  { %498 = vrot.lane.b32.xlu0 %v4967_v36, %s4760_s0 }
 0x158   :  { %4036 = vmatmul.mubr.msk.f32.vlgmr.msra.gmra.mrb[4].mxu1 %vm324_vm2, %v4967_v36 }
 0x159   :  { %317 = vrot.lane.b32.xlu0 %v315_v38, %s4761_s18  ;;  %4042 = vmatprep.mubr.msk.f32.mxu1 %vm4758_vm0, %v4759_v1 }
 0x1c3   :  { %v4400_v41 = vpop.permute.xlu0 %4399 }
 0x1c4   :  { %v4402_v42 = vunpack.i.h.bf16 %v4400_v41  ;;  %v4401_v43 = vunpack.i.l.bf16 %v4400_v41 }
 0x1c6   :  { %v4295_v44 = vpack.c.bf16 %v4402_v42, %v4401_v43 }
 0x1c7   :  { %v4983_v45 = vpop.permute.xlu0 %498 }
 0x1c8   :  { %4297 = vmatpush3.bf16.xpose.msk.msra.mxu0 %vm4957_vm3, %v4295_v44 }
 0x1c9   :  { %4305 = vmatprep.subr.bf16.mxu0 %v4757_v0 }
 0x1cb   :  { %v318_v46 = vpop.permute.xlu0 %317 }
 0x1cc   :  { %v320_v47 = vadd.f32 %v318_v46, %v285_v28  ;;  %v321_v48 = vadd.f32 %v4027_v26, %v318_v46  ;;  %v323_v50 = vadd.f32 %v4979_v39, %v318_v46  ;;  %v322_v51 = vadd.f32 %v318_v46, %v4981_v40 }
 0x1ce   :  { %v4988_v49 = vpack.i.bf16 %v321_v48, %v320_v47  ;;  %v4996_v52 = vpack.i.bf16 %v323_v50, %v322_v51 }
 0x1cf   :  { %4050 = vmatmul.mubr.msk.f32.vlgmr.msra.gmra.mrb[2].mxu0 %vm324_vm2, %v4983_v45 }
 0x1d0   :  { %4070 = vmatprep.mubr.msk.f32.mxu0 %vm4758_vm0, %v4759_v1 }
 0x22b   :  { %v400_v53 = vpop.f32.mrb[4].mxu1 }
 0x22c   :  { %v405_v54 = vsel %vm404_vm4, %v400_v53, -inf  ;;  %v4037_v55 = vpop.f32.mrb[5].mxu1 }
 0x22d   :  { %406 = vmax.xlane.f32.xlu1 %v405_v54 }
 0x2a2   :  { %v576_v56 = vpop.f32.mrb[2].mxu0 }
 0x2a3   :  { %v4051_v57 = vpop.f32.mrb[3].mxu0  ;;  %v580_v58 = vsel %vm404_vm4, %v576_v56, -inf }
 0x2a4   :  { %581 = vmax.xlane.f32.xlu1 %v580_v58 }
 0x2ba   :  { %v407_v59 = vpop.xlane.xlu1 %406 }
 0x2bb   :  { %v408_v60 = vsub.f32 %v400_v53, %v407_v59 }
 0x2bd   :  { %v409_v61 = vmul.f32 1.442695, %v408_v60 }
 0x2bf   :  { %4488 = vpow2.f32 %v409_v61 }
 0x2c9   :  { %v4489_v62 = vpop.eup %4488 }
 0x2ca   :  { %v411_v63 = vsel %vm404_vm4, %v4489_v62, 0.0 }
 0x2cb   :  { %412 = vadd.xlane.f32.xlu1 %v411_v63 }
 0x2dc   :  { %4404 = vrot.lane.b32.xlu1 %v4988_v49, %s4762_s27 }
 0x2e0   :  { %4409 = vrot.lane.b32.xlu1 %v4988_v49, %s4763_s28 }
 0x2e4   :  { %4414 = vrot.lane.b32.xlu1 %v4961_v35, %s4764_s29 }
 0x2e8   :  { %675 = vrot.lane.b32.xlu1 %v4967_v36, %s4764_s29 }
 0x331   :  { %v582_v2 = vpop.xlane.xlu1 %581 }
 0x332   :  { %v583_v3 = vsub.f32 %v576_v56, %v582_v2 }
 0x334   :  { %v584_v4 = vmul.f32 1.442695, %v583_v3 }
 0x336   :  { %4490 = vpow2.f32 %v584_v4 }
 0x340   :  { %v4491_v5 = vpop.eup %4490 }
 0x341   :  { %v586_v6 = vsel %vm404_vm4, %v4491_v5, 0.0 }
 0x342   :  { %587 = vadd.xlane.f32.xlu0 %v586_v6 }
 0x358   :  { %4419 = vrot.lane.b32.xlu0 %v4988_v49, %s4765_s30  ;;  %v413_v9 = vpop.xlane.xlu1 %412 }
 0x359   :  { %4492 = vrcp.f32 %v413_v9 }
 0x35c   :  { %v4405_v13 = vpop.permute.xlu1 %4404 }
 0x35d   :  { %v4407_v15 = vunpack.i.h.bf16 %v4405_v13  ;;  %v4406_v17 = vunpack.i.l.bf16 %v4405_v13 }
 0x35f   :  { %v4292_v20 = vpack.c.bf16 %v4407_v15, %v4406_v17 }
 0x360   :  { %v4410_v22 = vpop.permute.xlu1 %4409 }
 0x361   :  { %v4412_v25 = vunpack.i.h.bf16 %v4410_v22  ;;  %v4411_v26 = vunpack.i.l.bf16 %v4410_v22  ;;  %4293 = vmatpush3.bf16.msra.mxu1 %v4292_v20 }
 0x362   :  { %4298 = vmatprep.subr.bf16.mxu1 %v4757_v0 }
 0x363   :  { %v4493_v27 = vpop.eup %4492  ;;  %v4299_v28 = vpack.c.bf16 %v4412_v25, %v4411_v26 }
 0x364   :  { %v415_v29 = vmul.f32 %v4493_v27, %v4489_v62  ;;  %v4415_v37 = vpop.permute.xlu1 %4414 }
 0x365   :  { %v4417_v41 = vunpack.i.h.bf16 %v4415_v37  ;;  %v4416_v42 = vunpack.i.l.bf16 %v4415_v37 }
 0x366   :  { %4043 = vmatmul.mubr.msk.f32.vlgmr.msra.gmra.mrb[6].mxu1 %vm404_vm4, %v415_v29 }
 0x367   :  { %4300 = vmatpush3.bf16.msra.mxu1 %v4299_v28  ;;  %4056 = vmatprep.mubr.msk.f32.mxu1 %vm4758_vm0, %v4759_v1  ;;  %v4302_v46 = vpack.c.bf16 %v4417_v41, %v4416_v42 }
 0x368   :  { %4301 = vmatprep.subr.bf16.mxu1 %v4757_v0  ;;  %v5024_v47 = vpop.permute.xlu1 %675 }
 0x3cf   :  { %v588_v30 = vpop.xlane.xlu0 %587 }
 0x3d0   :  { %4494 = vrcp.f32 %v588_v30 }
 0x3d3   :  { %v4420_v31 = vpop.permute.xlu0 %4419 }
 0x3d4   :  { %v4422_v32 = vunpack.i.h.bf16 %v4420_v31  ;;  %v4421_v34 = vunpack.i.l.bf16 %v4420_v31 }
 0x3d6   :  { %v4306_v38 = vpack.c.bf16 %v4422_v32, %v4421_v34 }
 0x3d8   :  { %4307 = vmatpush3.bf16.msra.mxu0 %v4306_v38 }
 0x3d9   :  { %4308 = vmatprep.subr.bf16.mxu0 %v4757_v0 }
 0x3da   :  { %v4495_v43 = vpop.eup %4494 }
 0x3db   :  { %v590_v44 = vmul.f32 %v4495_v43, %v4491_v5 }
 0x3dd   :  { %4057 = vmatmul.mubr.msk.f32.vlgmr.msra.gmra.mrb[8].mxu1 %vm404_vm4, %v590_v44  ;;  %v311_v44 = vadd.f32 %v4979_v39, %v4949_v24 }
 0x3de   :  { %4304 = vmatpush3.bf16.xpose.msk.msra.mxu1 %vm4957_vm3, %v4302_v46  ;;  %4063 = vmatprep.mubr.msk.f32.mxu1 %vm4758_vm0, %v4759_v1  ;;  %v310_v46 = vadd.f32 %v4949_v24, %v4981_v40 }
 0x3df   :  { %4312 = vmatprep.subr.bf16.mxu1 %v4757_v0 }
 0x3e5   :  { %4064 = vmatmul.mubr.msk.f32.vlgmr.msra.gmra.mrb[10].mxu1 %vm324_vm2, %v5024_v47 }
 0x3e6   :  { %4084 = vmatprep.mubr.msk.f32.mxu1 %vm4758_vm0, %v4759_v1 }
 0x439   :  { %v5030_v48 = vpop.f32.mrb[6].mxu1 }
 0x43a   :  { %v4044_v50 = vpop.f32.mrb[7].mxu1 }
 0x4b0   :  { %v5032_v51 = vpop.f32.mrb[8].mxu1 }
 0x4b1   :  { %v4058_v53 = vpop.f32.mrb[9].mxu1 }
 0x4b8   :  { %v753_v54 = vpop.f32.mrb[10].mxu1 }
 0x4b9   :  { %v4065_v55 = vpop.f32.mrb[11].mxu1  ;;  %v757_v56 = vsel %vm404_vm4, %v753_v54, -inf }
 0x4ba   :  { %758 = vmax.xlane.f32.xlu1 %v757_v56 }
 0x547   :  { %v759_v57 = vpop.xlane.xlu1 %758 }
 0x548   :  { %v760_v58 = vsub.f32 %v753_v54, %v759_v57 }
 0x54a   :  { %v761_v59 = vmul.f32 1.442695, %v760_v58 }
 0x54c   :  { %4496 = vpow2.f32 %v761_v59 }
 0x556   :  { %v4497_v60 = vpop.eup %4496 }
 0x557   :  { %v763_v61 = vsel %vm404_vm4, %v4497_v60, 0.0 }
 0x558   :  { %764 = vadd.xlane.f32.xlu0 %v763_v61 }
 0x56e   :  { %4424 = vrot.lane.b32.xlu0 %v4961_v35, %s4766_s8 }
 0x572   :  { %852 = vrot.lane.b32.xlu0 %v4967_v36, %s4766_s8 }
 0x5e5   :  { %v765_v62 = vpop.xlane.xlu0 %764 }
 0x5e6   :  { %4498 = vrcp.f32 %v765_v62 }
 0x5e9   :  { %v4425_v63 = vpop.permute.xlu0 %4424 }
 0x5ea   :  { %v4427_v2 = vunpack.i.h.bf16 %v4425_v63  ;;  %v4426_v3 = vunpack.i.l.bf16 %v4425_v63 }
 0x5ec   :  { %v4309_v6 = vpack.c.bf16 %v4427_v2, %v4426_v3 }
 0x5ed   :  { %v5046_v35 = vpop.permute.xlu0 %852 }
 0x5f0   :  { %v4499_v4 = vpop.eup %4498 }
 0x5f1   :  { %v767_v5 = vmul.f32 %v4499_v4, %v4497_v60  ;;  %v5080_v60 = vpack.i.bf16 %v311_v44, %v310_v46 }
 0x5f3   :  { %4071 = vmatmul.mubr.msk.f32.vlgmr.msra.gmra.mrb[4].mxu0 %vm404_vm4, %v767_v5 }
 0x5f4   :  { %4311 = vmatpush3.bf16.xpose.msk.msra.mxu0 %vm4957_vm3, %v4309_v6  ;;  %4077 = vmatprep.mubr.msk.f32.mxu0 %vm4758_vm0, %v4759_v1 }
 0x5f5   :  { %4319 = vmatprep.subr.bf16.mxu0 %v4757_v0 }
 0x5fb   :  { %4078 = vmatmul.mubr.msk.f32.vlgmr.msra.gmra.mrb[6].mxu0 %vm324_vm2, %v5046_v35 }
 0x5fc   :  { %4098 = vmatprep.mubr.msk.f32.mxu0 %vm4758_vm0, %v4759_v1 }
 0x6c6   :  { %v5052_v9 = vpop.f32.mrb[4].mxu0 }
 0x6c7   :  { %v4072_v13 = vpop.f32.mrb[5].mxu0 }
 0x6ce   :  { %v930_v15 = vpop.f32.mrb[6].mxu0 }
 0x6cf   :  { %v4079_v17 = vpop.f32.mrb[7].mxu0  ;;  %v934_v20 = vsel %vm404_vm4, %v930_v15, -inf }
 0x6d0   :  { %935 = vmax.xlane.f32.xlu0 %v934_v20 }
 0x6e6   :  { %4434 = vrot.lane.b32.xlu0 %v4996_v52, %s4762_s27 }
 0x75d   :  { %v936_v22 = vpop.xlane.xlu0 %935 }
 0x75e   :  { %v937_v25 = vsub.f32 %v930_v15, %v936_v22 }
 0x760   :  { %v938_v26 = vmul.f32 1.442695, %v937_v25 }
 0x761   :  { %v4435_v27 = vpop.permute.xlu0 %4434 }
 0x762   :  { %4500 = vpow2.f32 %v938_v26  ;;  %v4437_v28 = vunpack.i.h.bf16 %v4435_v27  ;;  %v4436_v29 = vunpack.i.l.bf16 %v4435_v27 }
 0x764   :  { %v4320_v30 = vpack.c.bf16 %v4437_v28, %v4436_v29 }
 0x766   :  { %4321 = vmatpush3.bf16.msra.mxu0 %v4320_v30 }
 0x767   :  { %4322 = vmatprep.subr.bf16.mxu0 %v4757_v0 }
 0x76c   :  { %v4501_v31 = vpop.eup %4500 }
 0x76d   :  { %v940_v32 = vsel %vm404_vm4, %v4501_v31, 0.0 }
 0x76e   :  { %941 = vadd.xlane.f32.xlu1 %v940_v32 }
 0x77f   :  { %4429 = vrot.lane.b32.xlu1 %v4988_v49, %s4767_s9  ;;  %v4316_v49 = vpack.c.bf16 %v311_v44, %v310_v46 }
 0x7fb   :  { %v942_v34 = vpop.xlane.xlu1 %941 }
 0x7fc   :  { %4502 = vrcp.f32 %v942_v34 }
 0x7ff   :  { %v4430_v37 = vpop.permute.xlu1 %4429 }
 0x800   :  { %v4432_v38 = vunpack.i.h.bf16 %v4430_v37  ;;  %v4431_v41 = vunpack.i.l.bf16 %v4430_v37 }
 0x802   :  { %v4313_v42 = vpack.c.bf16 %v4432_v38, %v4431_v41 }
 0x804   :  { %4314 = vmatpush3.bf16.msra.mxu1 %v4313_v42 }
 0x805   :  { %4315 = vmatprep.subr.bf16.mxu1 %v4757_v0 }
 0x806   :  { %v4503_v43 = vpop.eup %4502 }
 0x807   :  { %v944_v50 = vmul.f32 %v4503_v43, %v4501_v31 }
 0x809   :  { %4085 = vmatmul.mubr.msk.f32.vlgmr.msra.gmra.mrb[12].mxu1 %vm404_vm4, %v944_v50 }
 0x80a   :  { %4091 = vmatprep.mubr.msk.f32.mxu1 %vm4758_vm0, %v4759_v1 }
 0x80d   :  { %4318 = vmatpush3.bf16.xpose.msk.msra.mxu1 %vm4957_vm3, %v4316_v49 }
 0x80e   :  { %4326 = vmatprep.subr.bf16.mxu1 %v4757_v0 }
 0x814   :  { %4092 = vmatmul.mubr.msk.f32.vlgmr.msra.gmra.mrb[14].mxu1 %vm324_vm2, %v4967_v36 }
 0x815   :  { %4112 = vmatprep.mubr.msk.f32.mxu1 %vm4758_vm0, %v4759_v1 }
 0x8dc   :  { %v5076_v39 = vpop.f32.mrb[12].mxu1 }
 0x8dd   :  { %v4086_v24 = vpop.f32.mrb[13].mxu1 }
 0x8e7   :  { %v1105_v40 = vpop.f32.mrb[14].mxu1 }
 0x8e8   :  { %v4093_v53 = vpop.f32.mrb[15].mxu1  ;;  %v1109_v54 = vsel %vm404_vm4, %v1105_v40, -inf }
 0x8e9   :  { %1110 = vmax.xlane.f32.xlu1 %v1109_v54 }
 0x976   :  { %v1111_v55 = vpop.xlane.xlu1 %1110 }
 0x977   :  { %v1112_v56 = vsub.f32 %v1105_v40, %v1111_v55 }
 0x979   :  { %v1113_v57 = vmul.f32 1.442695, %v1112_v56 }
 0x97b   :  { %4504 = vpow2.f32 %v1113_v57 }
 0x985   :  { %v4505_v58 = vpop.eup %4504 }
 0x986   :  { %v1115_v59 = vsel %vm404_vm4, %v4505_v58, 0.0 }
 0x987   :  { %1116 = vadd.xlane.f32.xlu0 %v1115_v59 }
 0x99d   :  { %4439 = vrot.lane.b32.xlu0 %v5080_v60, %s4760_s0 }
 0xa14   :  { %v1117_v61 = vpop.xlane.xlu0 %1116 }
 0xa15   :  { %4506 = vrcp.f32 %v1117_v61 }
 0xa18   :  { %v4440_v62 = vpop.permute.xlu0 %4439 }
 0xa19   :  { %v4442_v63 = vunpack.i.h.bf16 %v4440_v62  ;;  %v4441_v2 = vunpack.i.l.bf16 %v4440_v62 }
 0xa1b   :  { %v4323_v5 = vpack.c.bf16 %v4442_v63, %v4441_v2 }
 0xa1f   :  { %v4507_v3 = vpop.eup %4506 }
 0xa20   :  { %v1119_v4 = vmul.f32 %v4507_v3, %v4505_v58 }
 0xa22   :  { %4099 = vmatmul.mubr.msk.f32.vlgmr.msra.gmra.mrb[8].mxu0 %vm404_vm4, %v1119_v4 }
 0xa23   :  { %4325 = vmatpush3.bf16.xpose.msk.msra.mxu0 %vm4957_vm3, %v4323_v5  ;;  %4105 = vmatprep.mubr.msk.f32.mxu0 %vm4758_vm0, %v4759_v1 }
 0xa24   :  { %4333 = vmatprep.subr.bf16.mxu0 %v4757_v0 }
 0xa2a   :  { %4106 = vmatmul.mubr.msk.f32.vlgmr.msra.gmra.mrb[10].mxu0 %vm324_vm2, %v4983_v45 }
 0xa2b   :  { %4126 = vmatprep.mubr.msk.f32.mxu0 %vm4758_vm0, %v4759_v1 }
 0xaf5   :  { %v5094_v6 = vpop.f32.mrb[8].mxu0 }
 0xaf6   :  { %v4100_v13 = vpop.f32.mrb[9].mxu0 }
 0xafd   :  { %v1276_v15 = vpop.f32.mrb[10].mxu0 }
 0xafe   :  { %v4107_v17 = vpop.f32.mrb[11].mxu0  ;;  %v1280_v20 = vsel %vm404_vm4, %v1276_v15, -inf }
 0xaff   :  { %1281 = vmax.xlane.f32.xlu1 %v1280_v20 }
 0xb10   :  { %4444 = vrot.lane.b32.xlu1 %v4996_v52, %s4763_s28 }
 0xb14   :  { %4449 = vrot.lane.b32.xlu1 %v5080_v60, %s4764_s29 }
 0xb8c   :  { %v1282_v22 = vpop.xlane.xlu1 %1281 }
 0xb8d   :  { %v1283_v25 = vsub.f32 %v1276_v15, %v1282_v22 }
 0xb8f   :  { %v1284_v45 = vmul.f32 1.442695, %v1283_v25 }
 0xb90   :  { %v4445_v26 = vpop.permute.xlu1 %4444 }
 0xb91   :  { %4508 = vpow2.f32 %v1284_v45  ;;  %v4447_v27 = vunpack.i.h.bf16 %v4445_v26  ;;  %v4446_v28 = vunpack.i.l.bf16 %v4445_v26 }
 0xb93   :  { %v4327_v29 = vpack.c.bf16 %v4447_v27, %v4446_v28 }
 0xb94   :  { %v4450_v41 = vpop.permute.xlu1 %4449 }
 0xb95   :  { %4328 = vmatpush3.bf16.msra.mxu1 %v4327_v29  ;;  %v4452_v43 = vunpack.i.h.bf16 %v4450_v41  ;;  %v4451_v44 = vunpack.i.l.bf16 %v4450_v41 }
 0xb96   :  { %4329 = vmatprep.subr.bf16.mxu1 %v4757_v0 }
 0xb97   :  { %v4330_v49 = vpack.c.bf16 %v4452_v43, %v4451_v44 }
 0xb9b   :  { %v4509_v30 = vpop.eup %4508 }
 0xb9c   :  { %v1286_v31 = vsel %vm404_vm4, %v4509_v30, 0.0 }
 0xb9d   :  { %1287 = vadd.xlane.f32.xlu0 %v1286_v31 }
 0xbb3   :  { %4454 = vrot.lane.b32.xlu0 %v4996_v52, %s4765_s30 }
 0xc2a   :  { %v1288_v32 = vpop.xlane.xlu0 %1287 }
 0xc2b   :  { %4510 = vrcp.f32 %v1288_v32  ;;  %v497_v32 = vadd.f32 %v5030_v48, %v4967_v36  ;;  %v121_v48 = vld [vmem:[#allocation10] sm:$0xff] }
 0xc2e   :  { %v4455_v34 = vpop.permute.xlu0 %4454 }
 0xc2f   :  { %v4457_v37 = vunpack.i.h.bf16 %v4455_v34  ;;  %v4456_v38 = vunpack.i.l.bf16 %v4455_v34 }
 0xc31   :  { %v4334_v42 = vpack.c.bf16 %v4457_v37, %v4456_v38 }
 0xc33   :  { %4335 = vmatpush3.bf16.msra.mxu0 %v4334_v42 }
 0xc34   :  { %4336 = vmatprep.subr.bf16.mxu0 %v4757_v0 }
 0xc35   :  { %v4511_v46 = vpop.eup %4510 }
 0xc36   :  { %v1290_v50 = vmul.f32 %v4511_v46, %v4509_v30  ;;  %v122_v46 = vld [vmem:[#allocation10 + $0x8] sm:$0xff] }
 0xc38   :  { %4113 = vmatmul.mubr.msk.f32.vlgmr.msra.gmra.mrb[16].mxu1 %vm404_vm4, %v1290_v50  ;;  %v123_v50 = vld [vmem:[#allocation10 + $0x10] sm:$0xff] }
 0xc39   :  { %4332 = vmatpush3.bf16.xpose.msk.msra.mxu1 %vm4957_vm3, %v4330_v49  ;;  %4119 = vmatprep.mubr.msk.f32.mxu1 %vm4758_vm0, %v4759_v1  ;;  %v4351_v49 = vpack.c.bf16 %v122_v46, %v121_v48 }
 0xc3a   :  { %4340 = vmatprep.subr.bf16.mxu1 %v4757_v0 }
 0xc40   :  { %4120 = vmatmul.mubr.msk.f32.vlgmr.msra.gmra.mrb[18].mxu1 %vm324_vm2, %v5024_v47 }
 0xc41   :  { %4140 = vmatprep.mubr.msk.f32.mxu1 %vm4758_vm0, %v4759_v1 }
 0xd0b   :  { %v1366_v24 = vpop.f32.mrb[16].mxu1 }
 0xd0c   :  { %v4114_v40 = vpop.f32.mrb[17].mxu1 }
 0xd13   :  { %v1449_v53 = vpop.f32.mrb[18].mxu1 }
 0xd14   :  { %v4121_v54 = vpop.f32.mrb[19].mxu1  ;;  %v1453_v55 = vsel %vm404_vm4, %v1449_v53, -inf }
 0xd15   :  { %1454 = vmax.xlane.f32.xlu1 %v1453_v55 }
 0xda2   :  { %v1455_v56 = vpop.xlane.xlu1 %1454 }
 0xda3   :  { %v1456_v57 = vsub.f32 %v1449_v53, %v1455_v56 }
 0xda5   :  { %v1457_v58 = vmul.f32 1.442695, %v1456_v57 }
 0xda7   :  { %4512 = vpow2.f32 %v1457_v58  ;;  %v1201_v58 = vadd.f32 %v5094_v6, %v4967_v36 }
 0xdb1   :  { %v4513_v59 = vpop.eup %4512 }
 0xdb2   :  { %v1459_v0 = vsel %vm404_vm4, %v4513_v59, 0.0 }
 0xdb3   :  { %1460 = vadd.xlane.f32.xlu0 %v1459_v0 }
 0xdc9   :  { %4459 = vrot.lane.b32.xlu0 %v5080_v60, %s4766_s8 }
 0xe40   :  { %v1461_v47 = vpop.xlane.xlu0 %1460 }
 0xe41   :  { %4514 = vrcp.f32 %v1461_v47 }
 0xe44   :  { %v4460_v61 = vpop.permute.xlu0 %4459 }
 0xe45   :  { %v4462_v62 = vunpack.i.h.bf16 %v4460_v61  ;;  %v4461_v63 = vunpack.i.l.bf16 %v4460_v61 }
 0xe47   :  { %v4337_v4 = vpack.c.bf16 %v4462_v62, %v4461_v63  ;;  %v5179_v62 = vld [vmem:[#allocation11 + $0x8] sm:$0xff]  ;;  %v5183_v63 = vld [vmem:[#allocation11 + $0x10] sm:$0xff] }
 0xe4b   :  { %v4515_v2 = vpop.eup %4514 }
 0xe4c   :  { %v1463_v3 = vmul.f32 %v4515_v2, %v4513_v59  ;;  %v5185_v2 = vld [vmem:[#allocation11 + $0x18] sm:$0xff] }
 0xe4e   :  { %4127 = vmatmul.mubr.msk.f32.vlgmr.msra.gmra.mrb[12].mxu0 %vm404_vm4, %v1463_v3 }
 0xe4f   :  { %4339 = vmatpush3.bf16.xpose.msk.msra.mxu0 %vm4957_vm3, %v4337_v4  ;;  %4133 = vmatprep.mubr.msk.f32.mxu0 %vm4758_vm0, %v4759_v1  ;;  %v4473_v1 = vpack.i.bf16 %v4916_v14, %v4910_v11  ;;  %v4483_v4 = vpack.i.bf16 %v5185_v2, %v5183_v63 }
 0xe50   :  { %4352 = vmatprep.subr.bf16.mxu0 %v4351_v49 }
 0xe56   :  { %4134 = vmatmul.mubr.msk.f32.vlgmr.msra.gmra.mrb[14].mxu0 %vm324_vm2, %v5046_v35 }
 0xe57   :  { %4162 = vmatprep.mubr.msk.f32.mxu0 %vm133_vm1, %v4902_v7  ;;  %4354 = vmatpush3.bf16.msra.mxu0 %v4351_v49 }
 0xf21   :  { %v1539_v60 = vpop.f32.mrb[12].mxu0 }
 0xf22   :  { %v4128_v5 = vpop.f32.mrb[13].mxu0 }
 0xf29   :  { %v1622_v13 = vpop.f32.mrb[14].mxu0 }
 0xf2a   :  { %v4135_v15 = vpop.f32.mrb[15].mxu0  ;;  %v1626_v17 = vsel %vm404_vm4, %v1622_v13, -inf }
 0xf2b   :  { %1627 = vmax.xlane.f32.xlu1 %v1626_v17 }
 0xf3c   :  { %4464 = vrot.lane.b32.xlu1 %v4996_v52, %s4767_s9 }
 0xf40   :  { %4469 = vrot.lane.b32.xlu1 %v4468_v12, %s4762_s27 }
 0xf44   :  { %671 = vrot.lane.b32.xlu1 %v5032_v51, %s4751_s12 }
 0xf48   :  { %4474 = vrot.lane.b32.xlu1 %v4473_v1, %s4762_s27 }
 0xf4c   :  { %848 = vrot.lane.b32.xlu1 %v5052_v9, %s4768_s10 }
 0xf50   :  { %1025 = vrot.lane.b32.xlu1 %v5076_v39, %s4769_s13 }
 0xf54   :  { %1544 = vrot.lane.b32.xlu1 %v1539_v60, %s4768_s10  ;;  %v1831_v60 = vsub.s32 4, %v4940_v21 }
 0xf56   :  { %v1832_v5 = vrot.slane %v4946_v23, %v1831_v60 }
 0xfb8   :  { %v1628_v7 = vpop.xlane.xlu1 %1627 }
 0xfb9   :  { %v1629_v8 = vsub.f32 %v1622_v13, %v1628_v7  ;;  %v1726_v7 = vsub.s32 3, %v4940_v21 }
 0xfbb   :  { %v1630_v10 = vmul.f32 1.442695, %v1629_v8  ;;  %v1727_v8 = vrot.slane %v4946_v23, %v1726_v7 }
 0xfbc   :  { %v4465_v12 = vpop.permute.xlu1 %4464 }
 0xfbd   :  { %4516 = vpow2.f32 %v1630_v10  ;;  %v4467_v33 = vunpack.i.h.bf16 %v4465_v12  ;;  %v4466_v52 = vunpack.i.l.bf16 %v4465_v12 }
 0xfbf   :  { %v4341_v11 = vpack.c.bf16 %v4467_v33, %v4466_v52 }
 0xfc0   :  { %v4470_v14 = vpop.permute.xlu1 %4469 }
 0xfc1   :  { %v4472_v51 = vunpack.i.h.bf16 %v4470_v14  ;;  %v4471_v35 = vunpack.i.l.bf16 %v4470_v14  ;;  %4342 = vmatpush3.bf16.msra.mxu1 %v4341_v11 }
 0xfc3   :  { %v4343_v20 = vpack.c.bf16 %v4472_v51, %v4471_v35 }
 0xfc4   :  { %v672_v39 = vpop.permute.xlu1 %671 }
 0xfc5   :  { %4344 = vmatprep.subr.bf16.mxu1 %v4343_v20  ;;  %v674_v28 = vadd.f32 %v672_v39, %v4967_v36 }
 0xfc7   :  { %v4517_v9 = vpop.eup %4516  ;;  %v1029_v38 = vsel %vm324_vm2, %v497_v32, %v674_v28 }
 0xfc8   :  { %v1632_v22 = vsel %vm404_vm4, %v4517_v9, 0.0  ;;  %v4475_v25 = vpop.permute.xlu1 %4474 }
 0xfc9   :  { %1633 = vadd.xlane.f32.xlu0 %v1632_v22  ;;  %v4477_v29 = vunpack.i.h.bf16 %v4475_v25  ;;  %v4476_v30 = vunpack.i.l.bf16 %v4475_v25  ;;  %v2001_v22 = vsub.s32 5, %v4940_v21 }
 0xfcb   :  { %v4347_v41 = vpack.c.bf16 %v4477_v29, %v4476_v30  ;;  %v2002_v39 = vrot.slane %v4946_v23, %v2001_v22 }
 0xfcc   :  { %v849_v26 = vpop.permute.xlu1 %848 }
 0xfcd   :  { %v851_v31 = vadd.f32 %v849_v26, %v4967_v36 }
 0xfcf   :  { %v1030_v43 = vsel %vm404_vm4, %v1029_v38, %v851_v31 }
 0xfd0   :  { %v1026_v27 = vpop.permute.xlu1 %1025 }
 0xfd1   :  { %v1028_v34 = vadd.f32 %v1026_v27, %v4967_v36 }
 0xfd3   :  { %v5157_v44 = vsel %vm1031_vm5, %v1030_v43, %v1028_v34 }
 0xfd4   :  { %v1545_v57 = vpop.permute.xlu1 %1544 }
 0xfd5   :  { %v1547_v0 = vadd.f32 %v1545_v57, %v4967_v36 }
 0xfdf   :  { %1371 = vrot.lane.b32.xlu0 %v1366_v24, %s4751_s12  ;;  %v124_v24 = vld [vmem:[#allocation10 + $0x18] sm:$0xff] }
 0xfe0   :  { %v4355_v40 = vpack.c.bf16 %v124_v24, %v123_v50 }
 0xfe2   :  { %4356 = vmatprep.subr.bf16.mxu0 %v4355_v40 }
 0xfe3   :  { %4358 = vmatpush3.bf16.msra.mxu0 %v4355_v40 }
 0xfe6   :  { %4163 = vmatmul.mubr.msk.f32.vlgmr.msra.gmra.mrb[16].mxu0 %vm133_vm1, %v4921_v16 }
 0xfe7   :  { %4165 = vmatprep.mubr.msk.f32.mxu0 %vm133_vm1, %v4930_v18 }
 0xfea   :  { %4166 = vmatmul.mubr.msk.f32.gmra.mrb[18].mxu0 %vm133_vm1, %v4932_v19  ;;  %v5177_v19 = vld [vmem:[#allocation11] sm:$0xff] }
 0xfeb   :  { %v4359_v6 = vpack.c.bf16 %v5179_v62, %v5177_v19  ;;  %v4478_v3 = vpack.i.bf16 %v5179_v62, %v5177_v19 }
0x1056   :  { %v1634_v45 = vpop.xlane.xlu0 %1633 }
0x1057   :  { %4518 = vrcp.f32 %v1634_v45 }
0x105a   :  { %v1372_v55 = vpop.permute.xlu0 %1371 }
0x105b   :  { %v1374_v56 = vadd.f32 %v1372_v55, %v4967_v36 }
0x105d   :  { %v1721_v59 = vsel %vm324_vm2, %v1201_v58, %v1374_v56 }
0x105e   :  { %v1722_v61 = vsel %vm404_vm4, %v1721_v59, %v1547_v0 }
0x1061   :  { %v4519_v37 = vpop.eup %4518 }
0x1062   :  { %v1636_v42 = vmul.f32 %v4519_v37, %v4517_v9 }
0x1064   :  { %4141 = vmatmul.mubr.msk.f32.vlgmr.msra.gmra.mrb[20].mxu1 %vm404_vm4, %v1636_v42 }
0x1065   :  { %4151 = vmatprep.mubr.msk.f32.mxu1 %vm133_vm1, %v5157_v44  ;;  %4346 = vmatpush3.bf16.msra.mxu1 %v4343_v20 }
0x1066   :  { %4348 = vmatprep.subr.bf16.mxu1 %v4347_v41 }
0x1069   :  { %4350 = vmatpush3.bf16.msra.mxu1 %v4347_v41 }
0x106a   :  { %4360 = vmatprep.subr.bf16.mxu1 %v4359_v6 }
0x10b9   :  { %v4164_v13 = vpop.f32.mrb[16].mxu0 }
0x10ba   :  { %v1899_v15 = vpop.f32.mrb[17].mxu0  ;;  %v5195_v17 = vadd.f32 %v4164_v13, %v1832_v5 }
0x10bb   :  { %v5197_v1 = vadd.f32 %v1899_v15, %v1832_v5 }
0x10bc   :  { %2210 = vrot.lane.b32.xlu0 %v5195_v17, %s4760_s0 }
0x10bd   :  { %4181 = vmatprep.mubr.msk.f32.mxu0 %vm324_vm2, %v5197_v1  ;;  %v4167_v20 = vpop.f32.mrb[18].mxu0 }
0x10be   :  { %v1909_v9 = vpop.f32.mrb[19].mxu0  ;;  %v5240_v29 = vadd.f32 %v4167_v20, %v1832_v5 }
0x10bf   :  { %v5228_v23 = vadd.f32 %v1909_v9, %v1832_v5 }
0x10c0   :  { %2411 = vrot.lane.b32.xlu0 %v5197_v1, %s4764_s29 }
0x112e   :  { %v2211_v30 = vpop.permute.xlu0 %2210 }
0x1132   :  { %v2412_v31 = vpop.permute.xlu0 %2411 }
0x1137   :  { %v1712_v53 = vpop.f32.mrb[20].mxu1 }
0x1138   :  { %1717 = vrot.lane.b32.xlu1 %v1712_v53, %s4769_s13  ;;  %v4142_v54 = vpop.f32.mrb[21].mxu1 }
0x113c   :  { %2208 = vrot.lane.b32.xlu1 %v5197_v1, %s4760_s0 }
0x1140   :  { %2413 = vrot.lane.b32.xlu1 %v5195_v17, %s4764_s29 }
0x11aa   :  { %v1718_v47 = vpop.permute.xlu1 %1717 }
0x11ab   :  { %v1720_v16 = vadd.f32 %v1718_v47, %v4967_v36  ;;  %v4363_v36 = vpack.c.bf16 %v5185_v2, %v5183_v63 }
0x11ad   :  { %v1723_v18 = vsel %vm1031_vm5, %v1722_v61, %v1720_v16 }
0x11ae   :  { %4152 = vmatmul.mubr.msk.f32.vlgmr.msra.gmra.mrb[22].mxu1 %vm133_vm1, %v1723_v18  ;;  %v2209_v27 = vpop.permute.xlu1 %2208 }
0x11af   :  { %4362 = vmatpush3.bf16.msra.mxu1 %v4359_v6 }
0x11b0   :  { %4364 = vmatprep.subr.bf16.mxu1 %v4363_v36 }
0x11b2   :  { %v2414_v32 = vpop.permute.xlu1 %2413 }
0x11b3   :  { %4366 = vmatpush3.bf16.msra.mxu1 %v4363_v36 }
0x1281   :  { %v4153_v10 = vpop.f32.mrb[22].mxu1 }
0x1282   :  { %v1822_v12 = vadd.f32 %v4153_v10, %v1727_v8  ;;  %v1816_v33 = vpop.f32.mrb[23].mxu1 }
0x1283   :  { %v1817_v52 = vadd.f32 %v1816_v33, %v1727_v8 }
0x1284   :  { %v1826_v11 = vmax.f32 %v1822_v12, 0.0 }
0x1285   :  { %v1825_v14 = vmax.f32 %v1817_v52, 0.0 }
0x1286   :  { %v1828_v35 = vadd.f32 %v1826_v11, %v1723_v18 }
0x1287   :  { %v1827_v51 = vadd.f32 %v1825_v14, %v5157_v44 }
0x1289   :  { %4176 = vmatprep.mubr.msk.f32.mxu1 %vm133_vm1, %v1827_v51 }
0x128a   :  { %4177 = vmatmul.mubr.msk.f32.vlgmr.msra.gmra.mrb[24].mxu1 %vm133_vm1, %v1828_v35 }
0x135d   :  { %v5216_v25 = vpop.f32.mrb[24].mxu1 }
0x135e   :  { %v5218_v45 = vpop.f32.mrb[25].mxu1  ;;  %v2004_v28 = vadd.f32 %v5216_v25, %v2002_v39 }
0x135f   :  { %v2003_v26 = vadd.f32 %v2002_v39, %v5218_v45 }
0x1361   :  { %2618 = vrot.lane.b32.xlu0 %v2003_v26, %s4766_s8  ;;  %2212 = vrot.lane.b32.xlu1 %v2003_v26, %s4760_s0 }
0x1362   :  { %4179 = vmatprep.subr.msk.mxu0 %vm324_vm2, %v2003_v26 }
0x1363   :  { %4180 = vmatpush3.xpose.msk.msra.mxu0 %vm324_vm2, %v2003_v26 }
0x1365   :  { %2616 = vrot.lane.b32.xlu0 %v5195_v17, %s4766_s8  ;;  %2415 = vrot.lane.b32.xlu1 %v2003_v26, %s4764_s29 }
0x1366   :  { %4182 = vmatmul.mubr.msk.f32.vlgmr.msra.gmra.mrb[20].mxu0 %vm324_vm2, %v5195_v17 }
0x1367   :  { %4191 = vmatprep.mubr.msk.f32.mxu0 %vm324_vm2, %v2209_v27  ;;  %v2007_v27 = vsub.s32 6, %v4940_v21 }
0x1369   :  { %3016 = vrot.lane.b32.xlu0 %v5228_v23, %s4760_s0  ;;  %2614 = vrot.lane.b32.xlu1 %v5197_v1, %s4766_s8 }
0x136d   :  { %3223 = vrot.lane.b32.xlu0 %v2004_v28, %s4764_s29  ;;  %3020 = vrot.lane.b32.xlu1 %v2004_v28, %s4760_s0 }
0x1371   :  { %3221 = vrot.lane.b32.xlu0 %v5240_v29, %s4764_s29  ;;  %3018 = vrot.lane.b32.xlu1 %v5240_v29, %s4760_s0 }
0x1375   :  { %3422 = vrot.lane.b32.xlu0 %v5228_v23, %s4766_s8  ;;  %3219 = vrot.lane.b32.xlu1 %v5228_v23, %s4764_s29 }
0x1379   :  { %3426 = vrot.lane.b32.xlu1 %v2004_v28, %s4766_s8 }
0x137d   :  { %3424 = vrot.lane.b32.xlu1 %v5240_v29, %s4766_s8 }
0x13d3   :  { %v2619_v34 = vpop.permute.xlu0 %2618  ;;  %v2213_v37 = vpop.permute.xlu1 %2212 }
0x13d4   :  { %4189 = vmatprep.subr.msk.mxu0 %vm324_vm2, %v2213_v37 }
0x13d5   :  { %4190 = vmatpush3.xpose.msk.msra.mxu0 %vm324_vm2, %v2213_v37 }
0x13d7   :  { %v2617_v38 = vpop.permute.xlu0 %2616  ;;  %v2416_v41 = vpop.permute.xlu1 %2415 }
0x13d8   :  { %4192 = vmatmul.mubr.msk.f32.vlgmr.msra.gmra.mrb[22].mxu0 %vm324_vm2, %v2211_v30  ;;  %4199 = vmatprep.subr.msk.mxu0 %vm324_vm2, %v2416_v41 }
0x13d9   :  { %4200 = vmatpush3.xpose.msk.msra.mxu0 %vm324_vm2, %v2416_v41  ;;  %4201 = vmatprep.mubr.msk.f32.mxu0 %vm324_vm2, %v2412_v31 }
0x13da   :  { %4209 = vmatprep.subr.msk.mxu0 %vm324_vm2, %v2619_v34 }
0x13db   :  { %v3017_v42 = vpop.permute.xlu0 %3016  ;;  %v2615_v43 = vpop.permute.xlu1 %2614 }
0x13dc   :  { %4202 = vmatmul.mubr.msk.f32.vlgmr.msra.gmra.mrb[24].mxu0 %vm324_vm2, %v2414_v32 }
0x13dd   :  { %4210 = vmatpush3.xpose.msk.msra.mxu0 %vm324_vm2, %v2619_v34  ;;  %4211 = vmatprep.mubr.msk.f32.mxu0 %vm324_vm2, %v2615_v43 }
0x13de   :  { %4219 = vmatprep.subr.msk.mxu0 %vm324_vm2, %v2004_v28 }
0x13df   :  { %v3021_v44 = vpop.permute.xlu1 %3020  ;;  %v3224_v48 = vpop.permute.xlu0 %3223 }
0x13e0   :  { %4212 = vmatmul.mubr.msk.f32.vlgmr.msra.gmra.mrb[26].mxu0 %vm324_vm2, %v2617_v38 }
0x13e1   :  { %4220 = vmatpush3.xpose.msk.msra.mxu0 %vm324_vm2, %v2004_v28  ;;  %4221 = vmatprep.mubr.msk.f32.mxu0 %vm324_vm2, %v5228_v23  ;;  %v5350_v28 = vld [vmem:[%s5578_s6] sm:$0xff]  ;;  %s4770_s6 = smov 64  }
0x13e2   :  { %4229 = vmatprep.subr.msk.mxu0 %vm324_vm2, %v3021_v44  ;;  %v2008_v30 = vrot.slane %v5350_v28, %v2007_v27 }
0x13e3   :  { %v3019_v46 = vpop.permute.xlu1 %3018  ;;  %v3222_v50 = vpop.permute.xlu0 %3221 }
0x13e4   :  { %4222 = vmatmul.mubr.msk.f32.vlgmr.msra.gmra.mrb[28].mxu0 %vm324_vm2, %v5240_v29 }
0x13e5   :  { %4230 = vmatpush3.xpose.msk.msra.mxu0 %vm324_vm2, %v3021_v44  ;;  %4231 = vmatprep.mubr.msk.f32.mxu0 %vm324_vm2, %v3017_v42 }
0x13e6   :  { %4239 = vmatprep.subr.msk.mxu0 %vm324_vm2, %v3224_v48 }
0x13e7   :  { %v3220_v49 = vpop.permute.xlu1 %3219  ;;  %v3423_v40 = vpop.permute.xlu0 %3422 }
0x13e8   :  { %4232 = vmatmul.mubr.msk.f32.vlgmr.msra.gmra.mrb[30].mxu0 %vm324_vm2, %v3019_v46 }
0x13e9   :  { %4240 = vmatpush3.xpose.msk.msra.mxu0 %vm324_vm2, %v3224_v48  ;;  %4241 = vmatprep.mubr.msk.f32.mxu0 %vm324_vm2, %v3220_v49 }
0x13eb   :  { %v3427_v24 = vpop.permute.xlu1 %3426 }
0x13ec   :  { %4242 = vmatmul.mubr.msk.f32.vlgmr.msra.gmra.mrb[32].mxu0 %vm324_vm2, %v3222_v50  ;;  %4249 = vmatprep.subr.msk.mxu0 %vm324_vm2, %v3427_v24 }
0x13ed   :  { %4250 = vmatpush3.xpose.msk.msra.mxu0 %vm324_vm2, %v3427_v24  ;;  %4251 = vmatprep.mubr.msk.f32.mxu0 %vm324_vm2, %v3423_v40 }
0x13ef   :  { %v3425_v53 = vpop.permute.xlu1 %3424 }
0x13f0   :  { %4252 = vmatmul.mubr.msk.f32.vlgmr.msra.gmra.mrb[34].mxu0 %vm324_vm2, %v3425_v53 }
0x1439   :  { %v5282_v54 = vpop.f32.mrb[20].mxu0 }
0x143a   :  { %v5284_v55 = vpop.f32.mrb[21].mxu0  ;;  %v2102_v56 = vsel %vm324_vm2, %v5282_v54, -inf }
0x143b   :  { %2103 = vmax.xlane.f32.xlu1 %v2102_v56  ;;  %v2099_v57 = vsel %vm324_vm2, %v5284_v55, -inf }
0x143c   :  { %2100 = vmax.xlane.f32.xlu0 %v2099_v57 }
0x14ab   :  { %v5290_v58 = vpop.f32.mrb[22].mxu0 }
0x14ac   :  { %v5292_v59 = vpop.f32.mrb[23].mxu0  ;;  %v2298_v0 = vsel %vm324_vm2, %v5290_v58, -inf }
0x14ad   :  { %2299 = vmax.xlane.f32.xlu0 %v2298_v0  ;;  %v2295_v61 = vsel %vm324_vm2, %v5292_v59, -inf }
0x14af   :  { %v5296_v47 = vpop.f32.mrb[24].mxu0 }
0x14b0   :  { %v5298_v16 = vpop.f32.mrb[25].mxu0  ;;  %v2501_v60 = vsel %vm324_vm2, %v5296_v47, -inf }
0x14b1   :  { %2296 = vmax.xlane.f32.xlu0 %v2295_v61  ;;  %v2498_v18 = vsel %vm324_vm2, %v5298_v16, -inf }
0x14b2   :  { %2499 = vmax.xlane.f32.xlu1 %v2498_v18 }
0x14b3   :  { %v5304_v6 = vpop.f32.mrb[26].mxu0 }
0x14b4   :  { %v5306_v36 = vpop.f32.mrb[27].mxu0  ;;  %v2704_v7 = vsel %vm324_vm2, %v5304_v6, -inf }
0x14b5   :  { %2502 = vmax.xlane.f32.xlu0 %v2501_v60  ;;  %v2701_v5 = vsel %vm324_vm2, %v5306_v36, -inf }
0x14b6   :  { %2702 = vmax.xlane.f32.xlu1 %v2701_v5 }
0x14b7   :  { %v5312_v13 = vpop.f32.mrb[28].mxu0 }
0x14b8   :  { %v5314_v15 = vpop.f32.mrb[29].mxu0  ;;  %v2910_v33 = vsel %vm324_vm2, %v5312_v13, -inf }
0x14b9   :  { %2705 = vmax.xlane.f32.xlu0 %v2704_v7  ;;  %v2907_v8 = vsel %vm324_vm2, %v5314_v15, -inf }
0x14ba   :  { %2908 = vmax.xlane.f32.xlu1 %v2907_v8 }
0x14bb   :  { %v5320_v10 = vpop.f32.mrb[30].mxu0 }
0x14bc   :  { %v5322_v12 = vpop.f32.mrb[31].mxu0  ;;  %v3106_v51 = vsel %vm324_vm2, %v5320_v10, -inf }
0x14bd   :  { %2911 = vmax.xlane.f32.xlu0 %v2910_v33  ;;  %v3103_v52 = vsel %vm324_vm2, %v5322_v12, -inf }
0x14be   :  { %3104 = vmax.xlane.f32.xlu1 %v3103_v52 }
0x14bf   :  { %v5328_v11 = vpop.f32.mrb[32].mxu0 }
0x14c0   :  { %v5330_v14 = vpop.f32.mrb[33].mxu0  ;;  %v3309_v22 = vsel %vm324_vm2, %v5328_v11, -inf }
0x14c1   :  { %3107 = vmax.xlane.f32.xlu0 %v3106_v51  ;;  %v3306_v35 = vsel %vm324_vm2, %v5330_v14, -inf }
0x14c2   :  { %3307 = vmax.xlane.f32.xlu1 %v3306_v35 }
0x14c3   :  { %v5336_v20 = vpop.f32.mrb[34].mxu0 }
0x14c4   :  { %v5338_v9 = vpop.f32.mrb[35].mxu0  ;;  %v3512_v26 = vsel %vm324_vm2, %v5336_v20, -inf }
0x14c5   :  { %3310 = vmax.xlane.f32.xlu0 %v3309_v22  ;;  %v3509_v39 = vsel %vm324_vm2, %v5338_v9, -inf }
0x14c6   :  { %3510 = vmax.xlane.f32.xlu1 %v3509_v39 }
0x14c8   :  { %v2104_v31 = vpop.xlane.xlu1 %2103 }
0x14c9   :  { %3513 = vmax.xlane.f32.xlu0 %v3512_v26  ;;  %v2101_v24 = vpop.xlane.xlu0 %2100  ;;  %v2106_v53 = vsub.f32 %v5282_v54, %v2104_v31 }
0x14ca   :  { %v2105_v57 = vsub.f32 %v5284_v55, %v2101_v24 }
0x14cb   :  { %v2109_v56 = vmul.f32 1.442695, %v2106_v53 }
0x14cc   :  { %v2107_v61 = vmul.f32 1.442695, %v2105_v57 }
0x14cd   :  { %4520 = vpow2.f32 %v2109_v56 }
0x14ce   :  { %4522 = vpow2.f32 %v2107_v61 }
0x14d7   :  { %2010 = vrot.lane.b32.xlu1 %v2008_v30, %s4761_s18  ;;  %v5384_v52 = vpop.eup %4520 }
0x14d8   :  { %v5389_v35 = vpop.eup %4522 }
0x14d9   :  { %v2111_v22 = vsel %vm324_vm2, %v5389_v35, 0.0 }
0x153a   :  { %v2300_v40 = vpop.xlane.xlu0 %2299 }
0x153e   :  { %v2297_v0 = vpop.xlane.xlu0 %2296 }
0x153f   :  { %v2500_v32 = vpop.xlane.xlu1 %2499  ;;  %v2301_v5 = vsub.f32 %v5292_v59, %v2297_v0 }
0x1541   :  { %v2303_v7 = vmul.f32 1.442695, %v2301_v5 }
0x1542   :  { %v2503_v18 = vpop.xlane.xlu0 %2502 }
0x1543   :  { %v2703_v34 = vpop.xlane.xlu1 %2702  ;;  %v2505_v8 = vsub.f32 %v5296_v47, %v2503_v18 }
0x1544   :  { %v2707_v59 = vsub.f32 %v5306_v36, %v2703_v34 }
0x1545   :  { %v2508_v55 = vmul.f32 1.442695, %v2505_v8 }
0x1546   :  { %v2706_v33 = vpop.xlane.xlu0 %2705  ;;  %v2709_v26 = vmul.f32 1.442695, %v2707_v59 }
0x1547   :  { %v5354_v37 = vpop.xlane.xlu1 %2908  ;;  %v2708_v51 = vsub.f32 %v5304_v6, %v2706_v33 }
0x1548   :  { %v2913_v38 = vsub.f32 %v5314_v15, %v5354_v37  ;;  %v2504_v15 = vsub.f32 %v5298_v16, %v2500_v32 }
0x1549   :  { %v2711_v16 = vmul.f32 1.442695, %v2708_v51 }
0x154a   :  { %v2506_v54 = vmul.f32 1.442695, %v2504_v15  ;;  %v2912_v47 = vpop.xlane.xlu0 %2911 }
0x154b   :  { %v5358_v41 = vpop.xlane.xlu1 %3104  ;;  %v2914_v6 = vsub.f32 %v5312_v13, %v2912_v47 }
0x154c   :  { %v3109_v42 = vsub.f32 %v5322_v12, %v5358_v41 }
0x154d   :  { %v2917_v36 = vmul.f32 1.442695, %v2914_v6 }
0x154e   :  { %v3108_v32 = vpop.xlane.xlu0 %3107 }
0x154f   :  { %v5362_v43 = vpop.xlane.xlu1 %3307  ;;  %v3110_v24 = vsub.f32 %v5320_v10, %v3108_v32 }
0x1550   :  { %v3312_v44 = vsub.f32 %v5330_v14, %v5362_v43 }
0x1551   :  { %v3113_v56 = vmul.f32 1.442695, %v3110_v24 }
0x1552   :  { %v3311_v57 = vpop.xlane.xlu0 %3310 }
0x1553   :  { %v5366_v48 = vpop.xlane.xlu1 %3510  ;;  %v3313_v10 = vsub.f32 %v5328_v11, %v3311_v57  ;;  %v3314_v11 = vmul.f32 1.442695, %v3312_v44 }
0x1554   :  { %v3515_v46 = vsub.f32 %v5338_v9, %v5366_v48 }
0x1556   :  { %v3514_v5 = vpop.xlane.xlu0 %3513 }
0x1557   :  { %v5370_v50 = vpop.permute.xlu1 %2010  ;;  %v3516_v41 = vsub.f32 %v5336_v20, %v3514_v5  ;;  %v3517_v20 = vmul.f32 1.442695, %v3515_v46 }
0x1558   :  { %v2013_v49 = vadd.f32 %v5370_v50, %v5218_v45  ;;  %v2302_v45 = vsub.f32 %v5290_v58, %v2300_v40  ;;  %v2114_v58 = vsel %vm324_vm2, %v5384_v52, 0.0  ;;  %v2014_v12 = vadd.f32 %v5216_v25, %v5370_v50 }
0x155a   :  { %2122 = vrot.lane.b32.xlu1 %v2013_v49, %s4762_s27  ;;  %2317 = vrot.lane.b32.xlu0 %v2013_v49, %s4763_s28  ;;  %v2305_v60 = vmul.f32 1.442695, %v2302_v45 }
0x155c   :  { %4524 = vpow2.f32 %v2305_v60  ;;  %v3316_v60 = vmul.f32 1.442695, %v3313_v10 }
0x155d   :  { %4526 = vpow2.f32 %v2303_v7 }
0x155e   :  { %2520 = vrot.lane.b32.xlu1 %v2013_v49, %s4765_s30  ;;  %4528 = vpow2.f32 %v2506_v54  ;;  %v3519_v54 = vmul.f32 1.442695, %v3516_v41 }
0x155f   :  { %4530 = vpow2.f32 %v2508_v55 }
0x1560   :  { %4532 = vpow2.f32 %v2711_v16 }
0x1561   :  { %4534 = vpow2.f32 %v2709_v26 }
0x1562   :  { %2723 = vrot.lane.b32.xlu1 %v2013_v49, %s4767_s9  ;;  %v2915_v49 = vmul.f32 1.442695, %v2913_v38  ;;  %4536 = vpow2.f32 %v2917_v36  ;;  %v3111_v38 = vmul.f32 1.442695, %v3109_v42 }
0x1564   :  { %4538 = vpow2.f32 %v2915_v49 }
0x1565   :  { %4540 = vpow2.f32 %v3113_v56 }
0x1566   :  { %v5394_v39 = vpop.eup %4524  ;;  %4542 = vpow2.f32 %v3111_v38 }
0x1567   :  { %v2310_v27 = vsel %vm324_vm2, %v5394_v39, 0.0  ;;  %v5399_v30 = vpop.eup %4526  ;;  %4544 = vpow2.f32 %v3316_v60 }
0x1568   :  { %v5401_v31 = vpop.eup %4528  ;;  %v2307_v34 = vsel %vm324_vm2, %v5399_v30, 0.0  ;;  %4546 = vpow2.f32 %v3314_v11 }
0x1569   :  { %v5405_v37 = vpop.eup %4530  ;;  %v2510_v13 = vsel %vm324_vm2, %v5401_v31, 0.0  ;;  %4548 = vpow2.f32 %v3519_v54 }
0x156a   :  { %v2513_v40 = vsel %vm324_vm2, %v5405_v37, 0.0  ;;  %v5412_v53 = vpop.eup %4532  ;;  %4550 = vpow2.f32 %v3517_v20 }
0x156b   :  { %v2716_v0 = vsel %vm324_vm2, %v5412_v53, 0.0  ;;  %v5416_v61 = vpop.eup %4534 }
0x156c   :  { %v2713_v45 = vsel %vm324_vm2, %v5416_v61, 0.0  ;;  %v5424_v18 = vpop.eup %4536 }
0x156d   :  { %v2922_v15 = vsel %vm324_vm2, %v5424_v18, 0.0 }
0x156e   :  { %v5428_v7 = vpop.eup %4538 }
0x156f   :  { %v2919_v42 = vsel %vm324_vm2, %v5428_v7, 0.0  ;;  %v5439_v8 = vpop.eup %4540 }
0x1570   :  { %v3118_v25 = vsel %vm324_vm2, %v5439_v8, 0.0  ;;  %v5444_v14 = vpop.eup %4542 }
0x1571   :  { %v3115_v43 = vsel %vm324_vm2, %v5444_v14, 0.0  ;;  %v5452_v44 = vpop.eup %4544 }
0x1572   :  { %v3321_v50 = vsel %vm324_vm2, %v5452_v44, 0.0  ;;  %v5456_v33 = vpop.eup %4546 }
0x1573   :  { %v3318_v9 = vsel %vm324_vm2, %v5456_v33, 0.0  ;;  %v5460_v48 = vpop.eup %4548 }
0x1574   :  { %v3524_v46 = vsel %vm324_vm2, %v5460_v48, 0.0  ;;  %v5464_v55 = vpop.eup %4550 }
0x1575   :  { %v3521_v51 = vsel %vm324_vm2, %v5464_v55, 0.0 }
0x1579   :  { %2115 = vadd.xlane.f32.xlu0 %v2114_v58 }
0x157d   :  { %2112 = vadd.xlane.f32.xlu0 %v2111_v22 }
0x1581   :  { %2311 = vadd.xlane.f32.xlu0 %v2310_v27 }
0x1585   :  { %2308 = vadd.xlane.f32.xlu0 %v2307_v34 }
0x1586   :  { %2511 = vadd.xlane.f32.xlu1 %v2510_v13 }
0x1589   :  { %2514 = vadd.xlane.f32.xlu0 %v2513_v40 }
0x158d   :  { %2717 = vadd.xlane.f32.xlu0 %v2716_v0 }
0x1591   :  { %2714 = vadd.xlane.f32.xlu0 %v2713_v45 }
0x1595   :  { %2923 = vadd.xlane.f32.xlu0 %v2922_v15 }
0x1597   :  { %2930 = vrot.lane.b32.xlu1 %v2014_v12, %s4762_s27 }
0x1599   :  { %2920 = vadd.xlane.f32.xlu0 %v2919_v42 }
0x159b   :  { %3125 = vrot.lane.b32.xlu1 %v2014_v12, %s4763_s28 }
0x159d   :  { %3119 = vadd.xlane.f32.xlu0 %v3118_v25 }
0x159f   :  { %3531 = vrot.lane.b32.xlu1 %v2014_v12, %s4767_s9 }
0x15a1   :  { %3116 = vadd.xlane.f32.xlu0 %v3115_v43 }
0x15a5   :  { %3322 = vadd.xlane.f32.xlu0 %v3321_v50 }
0x15a9   :  { %3319 = vadd.xlane.f32.xlu0 %v3318_v9 }
0x15ad   :  { %3525 = vadd.xlane.f32.xlu0 %v3524_v46 }
0x15b1   :  { %3522 = vadd.xlane.f32.xlu0 %v3521_v51 }
0x15c7   :  { %3328 = vrot.lane.b32.xlu0 %v2014_v12, %s4765_s30 }
0x15cb   :  { %4479 = vrot.lane.b32.xlu0 %v4478_v3, %s4770_s6 }
0x15cc   :  { %v2123_v58 = vpop.permute.xlu1 %2122  ;;  %v2318_v59 = vpop.permute.xlu0 %2317 }
0x15cd   :  { %4184 = vmatprep.subr.mxu1 %v2123_v58 }
0x15ce   :  { %4185 = vmatpush3.msra.mxu1 %v2123_v58 }
0x15cf   :  { %4194 = vmatprep.subr.mxu1 %v2318_v59  ;;  %4484 = vrot.lane.b32.xlu0 %v4483_v4, %s4770_s6 }
0x15d0   :  { %v2521_v47 = vpop.permute.xlu1 %2520 }
0x15d4   :  { %v2724_v6 = vpop.permute.xlu1 %2723 }
0x1606   :  { %v2116_v16 = vpop.xlane.xlu0 %2115 }
0x1607   :  { %4552 = vrcp.f32 %v2116_v16 }
0x160a   :  { %v2113_v22 = vpop.xlane.xlu0 %2112 }
0x160b   :  { %4554 = vrcp.f32 %v2113_v22 }
0x160e   :  { %v2312_v26 = vpop.xlane.xlu0 %2311 }
0x160f   :  { %4556 = vrcp.f32 %v2312_v26 }
0x1611   :  { %v4553_v32 = vpop.eup %4552 }
0x1612   :  { %v2309_v27 = vpop.xlane.xlu0 %2308  ;;  %v2120_v24 = vmul.f32 %v4553_v32, %v5384_v52 }
0x1613   :  { %4558 = vrcp.f32 %v2309_v27  ;;  %v2512_v36 = vpop.xlane.xlu1 %2511 }
0x1614   :  { %4560 = vrcp.f32 %v2512_v36 }
0x1615   :  { %v4555_v34 = vpop.eup %4554 }
0x1616   :  { %v2515_v13 = vpop.xlane.xlu0 %2514  ;;  %v2119_v49 = vmul.f32 %v4555_v34, %v5389_v35 }
0x1617   :  { %4562 = vrcp.f32 %v2515_v13 }
0x1618   :  { %4186 = vmatprep.mubr.msk.f32.mxu1 %vm324_vm2, %v2119_v49 }
0x1619   :  { %4187 = vmatmul.mubr.msk.f32.vlgmr.msra.gmra.mrb[26].mxu1 %vm324_vm2, %v2120_v24  ;;  %v4557_v56 = vpop.eup %4556 }
0x161a   :  { %4195 = vmatpush3.msra.mxu1 %v2318_v59  ;;  %v2718_v40 = vpop.xlane.xlu0 %2717  ;;  %v2316_v45 = vmul.f32 %v4557_v56, %v5394_v39 }
0x161b   :  { %4204 = vmatprep.subr.mxu1 %v2521_v47  ;;  %4564 = vrcp.f32 %v2718_v40 }
0x161d   :  { %v4559_v57 = vpop.eup %4558 }
0x161e   :  { %v4561_v0 = vpop.eup %4560  ;;  %v2715_v38 = vpop.xlane.xlu0 %2714  ;;  %v2315_v10 = vmul.f32 %v4559_v57, %v5399_v30 }
0x161f   :  { %4566 = vrcp.f32 %v2715_v38  ;;  %v2518_v52 = vmul.f32 %v4561_v0, %v5401_v31  ;;  %v2931_v30 = vpop.permute.xlu1 %2930 }
0x1620   :  { %4196 = vmatprep.mubr.msk.f32.mxu1 %vm324_vm2, %v2315_v10 }
0x1621   :  { %v4563_v35 = vpop.eup %4562  ;;  %4197 = vmatmul.mubr.msk.f32.vlgmr.msra.gmra.mrb[28].mxu1 %vm324_vm2, %v2316_v45 }
0x1622   :  { %v2519_v60 = vmul.f32 %v4563_v35, %v5405_v37  ;;  %4205 = vmatpush3.msra.mxu1 %v2521_v47  ;;  %4206 = vmatprep.mubr.msk.f32.mxu1 %vm324_vm2, %v2518_v52  ;;  %v2924_v5 = vpop.xlane.xlu0 %2923 }
0x1623   :  { %4214 = vmatprep.subr.mxu1 %v2724_v6  ;;  %4568 = vrcp.f32 %v2924_v5  ;;  %v3126_v41 = vpop.permute.xlu1 %3125 }
0x1625   :  { %4207 = vmatmul.mubr.msk.f32.vlgmr.msra.gmra.mrb[30].mxu1 %vm324_vm2, %v2519_v60  ;;  %v4565_v31 = vpop.eup %4564 }
0x1626   :  { %4215 = vmatpush3.msra.mxu1 %v2724_v6  ;;  %v2921_v39 = vpop.xlane.xlu0 %2920  ;;  %v2722_v37 = vmul.f32 %v4565_v31, %v5412_v53 }
0x1627   :  { %4224 = vmatprep.subr.mxu1 %v2931_v30  ;;  %4570 = vrcp.f32 %v2921_v39  ;;  %v3532_v26 = vpop.permute.xlu1 %3531 }
0x1629   :  { %v4567_v15 = vpop.eup %4566 }
0x162a   :  { %v3120_v12 = vpop.xlane.xlu0 %3119  ;;  %v2721_v11 = vmul.f32 %v4567_v15, %v5416_v61 }
0x162b   :  { %4572 = vrcp.f32 %v3120_v12 }
0x162c   :  { %4216 = vmatprep.mubr.msk.f32.mxu1 %vm324_vm2, %v2721_v11 }
0x162d   :  { %4217 = vmatmul.mubr.msk.f32.vlgmr.msra.gmra.mrb[32].mxu1 %vm324_vm2, %v2722_v37  ;;  %v4569_v54 = vpop.eup %4568 }
0x162e   :  { %4225 = vmatpush3.msra.mxu1 %v2931_v30  ;;  %v3117_v42 = vpop.xlane.xlu0 %3116  ;;  %v2928_v50 = vmul.f32 %v4569_v54, %v5424_v18 }
0x162f   :  { %4234 = vmatprep.subr.mxu1 %v3126_v41  ;;  %4574 = vrcp.f32 %v3117_v42 }
0x1631   :  { %v4571_v25 = vpop.eup %4570 }
0x1632   :  { %v3323_v20 = vpop.xlane.xlu0 %3322  ;;  %v2927_v43 = vmul.f32 %v4571_v25, %v5428_v7 }
0x1633   :  { %4576 = vrcp.f32 %v3323_v20 }
0x1634   :  { %4226 = vmatprep.mubr.msk.f32.mxu1 %vm324_vm2, %v2927_v43 }
0x1635   :  { %4227 = vmatmul.mubr.msk.f32.vlgmr.msra.gmra.mrb[34].mxu1 %vm324_vm2, %v2928_v50  ;;  %v4573_v61 = vpop.eup %4572 }
0x1636   :  { %4235 = vmatpush3.msra.mxu1 %v3126_v41  ;;  %v3320_v53 = vpop.xlane.xlu0 %3319  ;;  %v3124_v58 = vmul.f32 %v4573_v61, %v5439_v8 }
0x1637   :  { %4578 = vrcp.f32 %v3320_v53 }
0x1639   :  { %v4575_v9 = vpop.eup %4574 }
0x163a   :  { %v3526_v46 = vpop.xlane.xlu0 %3525  ;;  %v3123_v51 = vmul.f32 %v4575_v9, %v5444_v14 }
0x163b   :  { %4580 = vrcp.f32 %v3526_v46 }
0x163c   :  { %4236 = vmatprep.mubr.msk.f32.mxu1 %vm324_vm2, %v3123_v51 }
0x163d   :  { %4237 = vmatmul.mubr.msk.f32.vlgmr.msra.gmra.mrb[36].mxu1 %vm324_vm2, %v3124_v58  ;;  %v4577_v7 = vpop.eup %4576 }
0x163e   :  { %v3523_v18 = vpop.xlane.xlu0 %3522  ;;  %v3327_v22 = vmul.f32 %v4577_v7, %v5452_v44 }
0x163f   :  { %4582 = vrcp.f32 %v3523_v18 }
0x1641   :  { %v4579_v59 = vpop.eup %4578 }
0x1642   :  { %v3329_v16 = vpop.permute.xlu0 %3328  ;;  %v3326_v47 = vmul.f32 %v4579_v59, %v5456_v33 }
0x1643   :  { %4244 = vmatprep.subr.mxu1 %v3329_v16 }
0x1644   :  { %4245 = vmatpush3.msra.mxu1 %v3329_v16  ;;  %4246 = vmatprep.mubr.msk.f32.mxu1 %vm324_vm2, %v3326_v47 }
0x1645   :  { %4247 = vmatmul.mubr.msk.f32.vlgmr.msra.gmra.mrb[38].mxu1 %vm324_vm2, %v3327_v22  ;;  %4254 = vmatprep.subr.mxu1 %v3532_v26  ;;  %v4581_v8 = vpop.eup %4580 }
0x1646   :  { %4255 = vmatpush3.msra.mxu1 %v3532_v26  ;;  %v3530_v27 = vmul.f32 %v4581_v8, %v5460_v48  ;;  %v4480_v44 = vpop.permute.xlu0 %4479 }
0x1647   :  { %v4482_v33 = vunpack.i.h.bf16 %v4480_v44  ;;  %v4481_v36 = vunpack.i.l.bf16 %v4480_v44 }
0x1649   :  { %v4583_v14 = vpop.eup %4582  ;;  %v4367_v32 = vpack.c.bf16 %v4482_v33, %v4481_v36 }
0x164a   :  { %v3529_v6 = vmul.f32 %v4583_v14, %v5464_v55  ;;  %v4485_v48 = vpop.permute.xlu0 %4484 }
0x164b   :  { %4368 = vmatprep.subr.bf16.mxu0 %v4367_v32  ;;  %v4487_v55 = vunpack.i.h.bf16 %v4485_v48  ;;  %v4486_v34 = vunpack.i.l.bf16 %v4485_v48 }
0x164c   :  { %4256 = vmatprep.mubr.msk.f32.mxu1 %vm324_vm2, %v3529_v6  ;;  %4370 = vmatpush3.bf16.msra.mxu0 %v4367_v32 }
0x164d   :  { %4257 = vmatmul.mubr.msk.f32.vlgmr.msra.gmra.mrb[40].mxu1 %vm324_vm2, %v3530_v27  ;;  %v4371_v49 = vpack.c.bf16 %v4487_v55, %v4486_v34 }
0x164f   :  { %4372 = vmatprep.subr.bf16.mxu0 %v4371_v49 }
0x1650   :  { %4374 = vmatpush3.bf16.msra.mxu0 %v4371_v49 }
0x16ec   :  { %v4188_v13 = vpop.f32.mrb[26].mxu1 }
0x16ed   :  { %v2197_v24 = vpop.f32.mrb[27].mxu1  ;;  %v2207_v42 = vadd.f32 %v4188_v13, %v5195_v17 }
0x16ee   :  { %v2206_v31 = vadd.f32 %v2197_v24, %v5197_v1 }
0x16f4   :  { %v4198_v19 = vpop.f32.mrb[28].mxu1 }
0x16f5   :  { %2405 = vrot.lane.b32.xlu1 %v4198_v19, %s4751_s12  ;;  %v2392_v62 = vpop.f32.mrb[29].mxu1 }
0x16f8   :  { %v4208_v63 = vpop.f32.mrb[30].mxu1 }
0x16f9   :  { %2403 = vrot.lane.b32.xlu1 %v2392_v62, %s4751_s12  ;;  %v2595_v2 = vpop.f32.mrb[31].mxu1 }
0x16fa   :  { %2606 = vrot.lane.b32.xlu0 %v2595_v2, %s4768_s10 }
0x16fd   :  { %2608 = vrot.lane.b32.xlu1 %v4208_v63, %s4768_s10 }
0x1700   :  { %v4218_v3 = vpop.f32.mrb[32].mxu1 }
0x1701   :  { %2811 = vrot.lane.b32.xlu1 %v4218_v3, %s4769_s13  ;;  %v2798_v4 = vpop.f32.mrb[33].mxu1 }
0x1702   :  { %2809 = vrot.lane.b32.xlu0 %v2798_v4, %s4769_s13 }
0x1708   :  { %v4228_v40 = vpop.f32.mrb[34].mxu1 }
0x1709   :  { %v3005_v56 = vpop.f32.mrb[35].mxu1  ;;  %v3015_v22 = vadd.f32 %v4228_v40, %v5240_v29 }
0x170a   :  { %v3014_v59 = vadd.f32 %v3005_v56, %v5228_v23 }
0x1710   :  { %v4238_v57 = vpop.f32.mrb[36].mxu1 }
0x1711   :  { %3213 = vrot.lane.b32.xlu1 %v4238_v57, %s4751_s12  ;;  %v3200_v0 = vpop.f32.mrb[37].mxu1 }
0x1712   :  { %3211 = vrot.lane.b32.xlu0 %v3200_v0, %s4751_s12 }
0x1718   :  { %v4248_v38 = vpop.f32.mrb[38].mxu1 }
0x1719   :  { %3416 = vrot.lane.b32.xlu1 %v4248_v38, %s4768_s10  ;;  %v3403_v10 = vpop.f32.mrb[39].mxu1 }
0x171a   :  { %3414 = vrot.lane.b32.xlu0 %v3403_v10, %s4768_s10 }
0x1720   :  { %v4258_v45 = vpop.f32.mrb[40].mxu1 }
0x1721   :  { %3619 = vrot.lane.b32.xlu1 %v4258_v45, %s4769_s13  ;;  %v3606_v52 = vpop.f32.mrb[41].mxu1 }
0x1722   :  { %3617 = vrot.lane.b32.xlu0 %v3606_v52, %s4769_s13 }
0x1767   :  { %v2406_v35 = vpop.permute.xlu1 %2405 }
0x1768   :  { %v2410_v15 = vadd.f32 %v2406_v35, %v5195_v17 }
0x176a   :  { %v2818_v43 = vsel %vm324_vm2, %v2207_v42, %v2410_v15 }
0x176b   :  { %v2404_v60 = vpop.permute.xlu1 %2403 }
0x176c   :  { %v2409_v5 = vadd.f32 %v2404_v60, %v5197_v1  ;;  %v2607_v30 = vpop.permute.xlu0 %2606 }
0x176d   :  { %v2612_v12 = vadd.f32 %v2607_v30, %v5197_v1 }
0x176e   :  { %v2817_v11 = vsel %vm324_vm2, %v2206_v31, %v2409_v5 }
0x176f   :  { %v2609_v39 = vpop.permute.xlu1 %2608  ;;  %v2819_v50 = vsel %vm404_vm4, %v2817_v11, %v2612_v12 }
0x1770   :  { %v2613_v37 = vadd.f32 %v2609_v39, %v5195_v17 }
0x1772   :  { %v2820_v53 = vsel %vm404_vm4, %v2818_v43, %v2613_v37 }
0x1773   :  { %v2812_v41 = vpop.permute.xlu1 %2811 }
0x1774   :  { %v2816_v54 = vadd.f32 %v2812_v41, %v5195_v17  ;;  %v2810_v25 = vpop.permute.xlu0 %2809 }
0x1775   :  { %v2815_v20 = vadd.f32 %v2810_v25, %v5197_v1 }
0x1776   :  { %v2822_v9 = vsel %vm1031_vm5, %v2820_v53, %v2816_v54 }
0x1777   :  { %v2821_v61 = vsel %vm1031_vm5, %v2819_v50, %v2815_v20 }
0x1778   :  { %4267 = vmatprep.mubr.msk.f32.mxu0 %vm133_vm1, %v2821_v61 }
0x1779   :  { %4268 = vmatmul.mubr.msk.f32.vlgmr.msra.gmra.mrb[36].mxu0 %vm133_vm1, %v2822_v9 }
0x1783   :  { %v3214_v46 = vpop.permute.xlu1 %3213 }
0x1784   :  { %v3212_v51 = vpop.permute.xlu0 %3211  ;;  %v3218_v18 = vadd.f32 %v3214_v46, %v5240_v29 }
0x1785   :  { %v3217_v1 = vadd.f32 %v3212_v51, %v5228_v23 }
0x1786   :  { %v3626_v27 = vsel %vm324_vm2, %v3015_v22, %v3218_v18 }
0x1787   :  { %v3625_v14 = vsel %vm324_vm2, %v3014_v59, %v3217_v1 }
0x178b   :  { %v3417_v17 = vpop.permute.xlu1 %3416 }
0x178c   :  { %v3415_v58 = vpop.permute.xlu0 %3414  ;;  %v3421_v16 = vadd.f32 %v3417_v17, %v5240_v29 }
0x178d   :  { %v3420_v7 = vadd.f32 %v3415_v58, %v5228_v23 }
0x178e   :  { %v3628_v33 = vsel %vm404_vm4, %v3626_v27, %v3421_v16 }
0x178f   :  { %v3627_v44 = vsel %vm404_vm4, %v3625_v14, %v3420_v7 }
0x1793   :  { %v3620_v47 = vpop.permute.xlu1 %3619 }
0x1794   :  { %v3624_v26 = vadd.f32 %v3620_v47, %v5240_v29  ;;  %v3618_v8 = vpop.permute.xlu0 %3617  ;;  %v3633_v29 = vsub.s32 7, %v4940_v21 }
0x1795   :  { %v3623_v6 = vadd.f32 %v3618_v8, %v5228_v23 }
0x1796   :  { %v3630_v32 = vsel %vm1031_vm5, %v3628_v33, %v3624_v26  ;;  %v3634_v48 = vrot.slane %v5350_v28, %v3633_v29 }
0x1797   :  { %v3629_v36 = vsel %vm1031_vm5, %v3627_v44, %v3623_v6 }
0x1798   :  { %4270 = vmatprep.mubr.msk.f32.mxu0 %vm133_vm1, %v3629_v36 }
0x1799   :  { %4271 = vmatmul.mubr.msk.f32.gmra.mrb[38].mxu0 %vm133_vm1, %v3630_v32 }
0x184c   :  { %v4269_v55 = vpop.f32.mrb[36].mxu0 }
0x184d   :  { %v3735_v23 = vadd.f32 %v4269_v55, %v3634_v48  ;;  %v3729_v34 = vpop.f32.mrb[37].mxu0 }
0x184e   :  { %v3730_v13 = vadd.f32 %v3729_v34, %v3634_v48 }
0x184f   :  { %v3749_v49 = vmax.f32 %v3735_v23, 0.0 }
0x1850   :  { %v3748_v24 = vmax.f32 %v3730_v13, 0.0 }
0x1851   :  { %v3753_v19 = vadd.f32 %v3749_v49, %v2822_v9 }
0x1852   :  { %v3752_v62 = vadd.f32 %v3748_v24, %v2821_v61 }
0x1853   :  { %3757 = vst.msk [vmem:[#allocation13 + $0x8] sm:$0xff] %vm133_vm1, %v3753_v19 }
0x1854   :  { %3756 = vst.msk [vmem:[#allocation13] sm:$0xff] %vm133_vm1, %v3752_v62 }
0x186c   :  { %v4272_v63 = vpop.f32.mrb[38].mxu0 }
0x186d   :  { %v3745_v2 = vadd.f32 %v4272_v63, %v3634_v48  ;;  %v3739_v3 = vpop.f32.mrb[39].mxu0 }
0x186e   :  { %v3740_v4 = vadd.f32 %v3739_v3, %v3634_v48 }
0x186f   :  { %v3751_v40 = vmax.f32 %v3745_v2, 0.0 }
0x1870   :  { %v3750_v21 = vmax.f32 %v3740_v4, 0.0 }
0x1871   :  { %v3755_v28 = vadd.f32 %v3751_v40, %v3630_v32 }
0x1872   :  { %v3754_v56 = vadd.f32 %v3750_v21, %v3629_v36 }
0x1873   :  { %3759 = vst.msk [vmem:[#allocation13 + $0x18] sm:$0xff] %vm133_vm1, %v3755_v28 }
0x1874   :  { %3758 = vst.msk [vmem:[#allocation13 + $0x10] sm:$0xff] %vm133_vm1, %v3754_v56 }
0x1875   :  { %4728 = shalt.err (!%p4725_p10)
}
0x1876   :  { %s4729_s21 = scalar_lea.hbm %s5579_s7, 512 }
0x1877   :  { %p4730_p11 = scmp.ne.s32.totalorder %s5579_s7, %s4729_s21  ;;  %p4733_p12 = scmp.lt.u32.totalorder %s4729_s21, %s5579_s7 }
0x1879   :  { %p4735_p13 = pnand %p4733_p12, %p4730_p11 }
0x187b   :  { %4738 = shalt.err (!%p4735_p13)
}
0x187c   :  { %3771 = dma.vmem_to_hbm [thread:$0]  %s3766_s15, 512, %s5579_s7, [#allocation4], %s4750_s11, %s4750_s11, %s4751_s12  }
0x187d   :  { %4747 = dma.done.wait [#allocation4], 512  }
0x187e   :  { %4748 = vsyncadd [#allocation4], 4294966784 }
0x187f   :  { %3775 = vsyncpa [#allocation3], 1 }
0x1880   :  { %3776 = vsyncpa [#allocation6], 1 }
0x1881   :  { %3777 = vsyncpa [#allocation9], 1 }
0x1882   :  { %3778 = vsyncpa [#allocation12], 1 }
0x1883   :  { %3779 = vsyncpa [#allocation4], 1 }

</bundles_post_ra>
